<compile_context>
chip_gen: v7x
topology: tpu7x:2x2x1
jax: 0.10.0
libtpu: 0.0.40
codegen_flags: <defaults>
</compile_context>

<pallas_src>
from functools import partial

import jax
import jax.numpy as jnp
from jax.experimental import pallas as pl
from jax.experimental.pallas import tpu as pltpu

LANE = 128
MATMUL_DT = jnp.bfloat16          # MXU operand dtype on all generations (fp32 acc)


# --------------------------------------------------------------------------
# Device-aware constants / small helpers
# --------------------------------------------------------------------------

def _ru(x, m=LANE):
    return ((x + m - 1) // m) * m


def _device_kind():
    try:
        return jax.devices()[0].device_kind.lower()
    except Exception:
        return ""


_KIND = _device_kind()
_IS_V7 = "7" in _KIND                                    # v7x: 2 TCs, 64 MiB VMEM/TC
_BF16_ACT = any(t in _KIND for t in ("v6", "6e", "7"))   # bf16 EUP only on v6e/v7x
_ACT_DT = jnp.bfloat16 if _BF16_ACT else jnp.float32
_VMEM_LIMIT = (48 << 20) if _IS_V7 else (64 << 20)
_LSTM_VMEM_BUDGET = (22 << 20) if _IS_V7 else (44 << 20)


def _row_tile(n):
    """Large lane/sublane-friendly row tile; pad n up to a multiple of it."""
    rt = 1024
    while rt > 8 and rt > n:
        rt //= 2
    return rt, _ru(n, rt)


def _time_pad_chunk(t):
    """Padded sequence length: 16-step chunks when t > 16 (bounded unroll,
    bf16 (16,128) packing stays aligned); short sequences run as one chunk."""
    if t <= 16:
        return t
    return _ru(t, 16)


def _pad_rows(x, n_pad):
    n = x.shape[0]
    if n_pad == n:
        return x
    return jnp.pad(x, ((0, n_pad - n),) + ((0, 0),) * (x.ndim - 1))


def _const_spec_1d(arr):
    # Full-array block with a constant index map (1-D grid).
    return pl.BlockSpec(arr.shape, lambda i: (0, 0))


def _mm(x, w_ref):
    # Weights are pre-cast to bf16 on the host; cast only the activations.
    return jnp.dot(x.astype(w_ref.dtype), w_ref[...],
                   preferred_element_type=jnp.float32)


# --------------------------------------------------------------------------
# Pallas kernels
# --------------------------------------------------------------------------

def _encoder_kernel(obs_ref, act_ref, valid_ref,
                    ow1, ob1, ow2, ob2,
                    aw1, ab1, aw2, ab2,
                    ew1o, ew1a, eb1, ew2, eb2,
                    wih, bl,
                    xproj_ref):
    """Fused: mask -> obs enc -> act enc -> joint enc -> hoisted x @ W_ih + b."""
    obs = obs_ref[...] * valid_ref[...]                      # fused obs_valid mask
    h = jnp.maximum(_mm(obs, ow1) + ob1[...], 0.0)
    w_obs = _mm(h, ow2) + ob2[...]

    h = jnp.maximum(_mm(act_ref[...], aw1) + ab1[...], 0.0)
    w_act = _mm(h, aw2) + ab2[...]

    # joint encoder on concat([w_obs, w_act], -1), realized as a split weight
    h = jnp.maximum(_mm(w_obs, ew1o) + _mm(w_act, ew1a) + eb1[...], 0.0)
    w = _mm(h, ew2) + eb2[...]

    # hoisted LSTM input projection (x @ W_ih + b_ih + b_hh), stored bf16
    xproj_ref[...] = (_mm(w, wih) + bl[...]).astype(xproj_ref.dtype)


def _lstm_kernel(xp_ref, whh_ref, z_ref, h_sc, c_sc, xp_sc, z_sc, *, adt, hp, tt):
    """TT timesteps per grid step; only h @ W_hh + gate math per step.

    Gate order (i, f, g, o); each gate occupies a 128-lane-aligned slab of the
    padded 4*hp gate axis.  h/c carried in fp32 VMEM scratch across the time
    grid axis.  The bf16 x_proj block is staged into fp32 scratch once per
    chunk; hidden states are staged in fp32 and written back as one aligned
    bf16 block per chunk.
    """
    @pl.when(pl.program_id(1) == 0)
    def _():
        h_sc[...] = jnp.zeros_like(h_sc)
        c_sc[...] = jnp.zeros_like(c_sc)

    xp_sc[...] = xp_ref[...].astype(jnp.float32)   # aligned full-block load + cast
    whh = whh_ref[...]                             # bf16, pre-cast on the host

    for j in range(tt):                            # static unroll, tt <= 16
        gates = xp_sc[:, j, :] + jnp.dot(
            h_sc[...].astype(whh.dtype), whh, preferred_element_type=jnp.float32)
        ga = gates.astype(adt)                     # bf16 EUP on v6e/v7x, f32 on v5e
        i_g = jax.nn.sigmoid(ga[:, 0 * hp:1 * hp]).astype(jnp.float32)
        f_g = jax.nn.sigmoid(ga[:, 1 * hp:2 * hp]).astype(jnp.float32)
        g_g = jnp.tanh(ga[:, 2 * hp:3 * hp]).astype(jnp.float32)
        o_g = jax.nn.sigmoid(ga[:, 3 * hp:4 * hp]).astype(jnp.float32)
        c_new = f_g * c_sc[...] + i_g * g_g
        h_new = o_g * jnp.tanh(c_new.astype(adt)).astype(jnp.float32)
        c_sc[...] = c_new
        h_sc[...] = h_new
        z_sc[:, j, :] = h_new

    z_ref[...] = z_sc[...].astype(z_ref.dtype)     # one aligned bf16 block store


def _decoder_kernel(z_ref, dw1, db1, dwm, dbm, dwv, dbv, mean_ref, var_ref):
    """Fused: hidden layer + mean head + var head (elu(.) + 1)."""
    hd = jnp.maximum(_mm(z_ref[...], dw1) + db1[...], 0.0)
    mean_ref[...] = _mm(hd, dwm) + dbm[...]
    v = _mm(hd, dwv) + dbv[...]
    var_ref[...] = jnp.where(v > 0.0, v + 1.0, jnp.exp(v))   # elu(v) + 1


# --------------------------------------------------------------------------
# pallas_call wrappers
# --------------------------------------------------------------------------

def _encoder_forward(params, obs_f, act_f, valid_f):
    n = obs_f.shape[0]
    rt, n_pad = _row_tile(n)
    obs_f = _pad_rows(obs_f, n_pad)
    act_f = _pad_rows(act_f, n_pad)
    valid_f = _pad_rows(valid_f, n_pad)
    h4 = params["w_ih"].shape[1]
    wnames = ("obs_w1", "obs_b1", "obs_w2", "obs_b2",
              "act_w1", "act_b1", "act_w2", "act_b2",
              "enc_w1o", "enc_w1a", "enc_b1", "enc_w2", "enc_b2",
              "w_ih", "b_lstm")
    weights = [params[k] for k in wnames]
    x_proj = pl.pallas_call(
        _encoder_kernel,
        out_shape=jax.ShapeDtypeStruct((n_pad, h4), jnp.bfloat16),
        grid_spec=pltpu.PrefetchScalarGridSpec(
            num_scalar_prefetch=0,
            grid=(n_pad // rt,),
            in_specs=[
                pl.BlockSpec((rt, obs_f.shape[1]), lambda i: (i, 0)),
                pl.BlockSpec((rt, act_f.shape[1]), lambda i: (i, 0)),
                pl.BlockSpec((rt, 1), lambda i: (i, 0)),
            ] + [_const_spec_1d(w) for w in weights],
            out_specs=pl.BlockSpec((rt, h4), lambda i: (i, 0)),
        ),
        compiler_params=pltpu.CompilerParams(
            dimension_semantics=("parallel",),
            vmem_limit_bytes=_VMEM_LIMIT),
    )(obs_f, act_f, valid_f, *weights)
    return x_proj[:n]


def _lstm_btile(batch, tt, hp, h4):
    """Batch tile: split across cores only on v7x with healthy per-core M,
    then clamp to the VMEM budget while keeping an exact divisor of batch."""
    batch_core = batch
    if _IS_V7 and batch % 2 == 0 and batch // 2 >= 64:
        batch_core = batch // 2
    per_row = (2 * tt * h4 * 2          # x_proj blocks (bf16, 2-deep pipeline)
               + tt * h4 * 4            # x_proj fp32 staging scratch
               + 2 * tt * hp * 2        # z blocks (bf16, 2-deep pipeline)
               + tt * hp * 4            # z fp32 staging scratch
               + 2 * hp * 4)            # h / c fp32 scratch
    fixed = 2 * hp * h4 * 2             # W_hh (bf16, 2-deep)
    cap = max(1, (_LSTM_VMEM_BUDGET - fixed) // per_row)
    bt = max(1, min(batch_core, cap))
    while batch % bt != 0:
        bt -= 1
    return bt


def _lstm_forward(params, x_btc):
    batch, t_pad, h4 = x_btc.shape
    w_hh = params["w_hh"]
    hp = w_hh.shape[0]
    tt = 16 if (t_pad >= 16 and t_pad % 16 == 0) else t_pad
    btile = _lstm_btile(batch, tt, hp, h4)
    return pl.pallas_call(
        partial(_lstm_kernel, adt=_ACT_DT, hp=hp, tt=tt),
        out_shape=jax.ShapeDtypeStruct((batch, t_pad, hp), jnp.bfloat16),
        grid_spec=pltpu.PrefetchScalarGridSpec(
            num_scalar_prefetch=0,
            grid=(batch // btile, t_pad // tt),
            in_specs=[
                pl.BlockSpec((btile, tt, h4), lambda b, c: (b, c, 0)),
                pl.BlockSpec((hp, h4), lambda b, c: (0, 0)),
            ],
            out_specs=pl.BlockSpec((btile, tt, hp), lambda b, c: (b, c, 0)),
            scratch_shapes=[
                pltpu.VMEM((btile, hp), jnp.float32),       # h
                pltpu.VMEM((btile, hp), jnp.float32),       # c
                pltpu.VMEM((btile, tt, h4), jnp.float32),   # x_proj staging
                pltpu.VMEM((btile, tt, hp), jnp.float32),   # z staging
            ],
        ),
        compiler_params=pltpu.CompilerParams(
            dimension_semantics=("parallel", "arbitrary"),
            vmem_limit_bytes=_VMEM_LIMIT),
    )(x_btc, w_hh)


def _decoder_forward(params, z_flat):
    n, hp = z_flat.shape
    rt, n_pad = _row_tile(n)
    z_flat = _pad_rows(z_flat, n_pad)
    tgt_p = params["dec_wm"].shape[1]
    wnames = ("dec_w1", "dec_b1", "dec_wm", "dec_bm", "dec_wv", "dec_bv")
    weights = [params[k] for k in wnames]
    mean_p, var_p = pl.pallas_call(
        _decoder_kernel,
        out_shape=(jax.ShapeDtypeStruct((n_pad, tgt_p), jnp.float32),
                   jax.ShapeDtypeStruct((n_pad, tgt_p), jnp.float32)),
        grid_spec=pltpu.PrefetchScalarGridSpec(
            num_scalar_prefetch=0,
            grid=(n_pad // rt,),
            in_specs=[pl.BlockSpec((rt, hp), lambda i: (i, 0))]
                     + [_const_spec_1d(w) for w in weights],
            out_specs=(pl.BlockSpec((rt, tgt_p), lambda i: (i, 0)),
                       pl.BlockSpec((rt, tgt_p), lambda i: (i, 0))),
        ),
        compiler_params=pltpu.CompilerParams(
            dimension_semantics=("parallel",),
            vmem_limit_bytes=_VMEM_LIMIT),
    )(z_flat, *weights)
    return mean_p[:n], var_p[:n]


# --------------------------------------------------------------------------
# Deterministic parameter construction (synthetic init, zero-padded to lanes)
# --------------------------------------------------------------------------

def _pad_to(x, shape):
    return jnp.pad(x, [(0, t - s) for s, t in zip(x.shape, shape)])


def _linear(key, fan_in, fan_out, in_p, out_p):
    kw, kb = jax.random.split(key)
    s = 1.0 / fan_in ** 0.5
    w = jax.random.uniform(kw, (fan_in, fan_out), jnp.float32, -s, s)
    b = jax.random.uniform(kb, (1, fan_out), jnp.float32, -s, s)
    return _pad_to(w, (in_p, out_p)).astype(MATMUL_DT), _pad_to(b, (1, out_p))


def _lstm_params(key, in_dim, hid, in_p, hid_p):
    """PyTorch-style LSTM weights, transposed and per-gate lane-aligned.

    Gate order (i, f, g, o).  Gate g's real weights sit in lanes
    [g*hid_p, g*hid_p + hid); all padded rows/cols are zero so pad lanes of h
    never influence real lanes, and the combined bias b_ih + b_hh is folded in.
    """
    k1, k2, k3, k4 = jax.random.split(key, 4)
    s = 1.0 / hid ** 0.5
    w_ih = jax.random.uniform(k1, (in_dim, 4 * hid), jnp.float32, -s, s)
    w_hh = jax.random.uniform(k2, (hid, 4 * hid), jnp.float32, -s, s)
    b = (jax.random.uniform(k3, (1, 4 * hid), jnp.float32, -s, s)
         + jax.random.uniform(k4, (1, 4 * hid), jnp.float32, -s, s))
    w_ih_p = jnp.zeros((in_p, 4 * hid_p), jnp.float32)
    w_hh_p = jnp.zeros((hid_p, 4 * hid_p), jnp.float32)
    b_p = jnp.zeros((1, 4 * hid_p), jnp.float32)
    for g in range(4):
        src = slice(g * hid, (g + 1) * hid)
        dst = slice(g * hid_p, g * hid_p + hid)
        w_ih_p = w_ih_p.at[:in_dim, dst].set(w_ih[:, src])
        w_hh_p = w_hh_p.at[:hid, dst].set(w_hh[:, src])
        b_p = b_p.at[:, dst].set(b[:, src])
    return w_ih_p.astype(MATMUL_DT), w_hh_p.astype(MATMUL_DT), b_p


def init_params(key, obs_dim, act_dim, target_dim, lod, hidden=32, dec_hidden=32):
    lsd = 2 * lod
    H = 5 * lod
    hid_p, lod_p, lsd_p = _ru(hidden), _ru(lod), _ru(lsd)
    h_p, dechid_p, tgt_p = _ru(H), _ru(dec_hidden), _ru(target_dim)

    keys = jax.random.split(key, 10)
    p = {"target_dim": target_dim}

    # obs encoder: Linear(obs_dim->hidden)+ReLU -> Linear(hidden->lod)
    p["obs_w1"], p["obs_b1"] = _linear(keys[0], obs_dim, hidden, obs_dim, hid_p)
    p["obs_w2"], p["obs_b2"] = _linear(keys[1], hidden, lod, hid_p, lod_p)
    # act encoder
    p["act_w1"], p["act_b1"] = _linear(keys[2], act_dim, hidden, act_dim, hid_p)
    p["act_w2"], p["act_b2"] = _linear(keys[3], hidden, lod, hid_p, lod_p)
    # joint encoder on concat([w_obs, w_act]): Linear(2*lod->hidden)+ReLU -> Linear(hidden->lsd)
    kw, kb = jax.random.split(keys[4])
    s = 1.0 / (2 * lod) ** 0.5
    enc_w1 = jax.random.uniform(kw, (2 * lod, hidden), jnp.float32, -s, s)
    enc_b1 = jax.random.uniform(kb, (1, hidden), jnp.float32, -s, s)
    p["enc_w1o"] = _pad_to(enc_w1[:lod], (lod_p, hid_p)).astype(MATMUL_DT)   # on w_obs
    p["enc_w1a"] = _pad_to(enc_w1[lod:], (lod_p, hid_p)).astype(MATMUL_DT)   # on w_act
    p["enc_b1"] = _pad_to(enc_b1, (1, hid_p))
    p["enc_w2"], p["enc_b2"] = _linear(keys[5], hidden, lsd, hid_p, lsd_p)

    # LSTM: input lsd, hidden 5*lod, gate order ifgo, lane-aligned padded gates
    p["w_ih"], p["w_hh"], p["b_lstm"] = _lstm_params(keys[6], lsd, H, lsd_p, h_p)

    # decoder: Linear(H->dec_hidden)+ReLU -> mean head, var head (elu+1)
    p["dec_w1"], p["dec_b1"] = _linear(keys[7], H, dec_hidden, h_p, dechid_p)
    p["dec_wm"], p["dec_bm"] = _linear(keys[8], dec_hidden, target_dim, dechid_p, tgt_p)
    p["dec_wv"], p["dec_bv"] = _linear(keys[9], dec_hidden, target_dim, dechid_p, tgt_p)
    return p


# --------------------------------------------------------------------------
# Forward pass (mirrors LSTMBaseline.forward)
# --------------------------------------------------------------------------

def lstm_baseline_forward(params, obs_batch, act_batch, obs_valid_batch):
    B, T, _ = obs_batch.shape
    td = params["target_dim"]

    obs_f = obs_batch.reshape(B * T, -1)
    act_f = act_batch.reshape(B * T, -1)
    valid_f = obs_valid_batch.reshape(B * T, 1).astype(obs_batch.dtype)

    # 1) fused encoders + hoisted LSTM input projection (bf16 intermediate)
    x_proj = _encoder_forward(params, obs_f, act_f, valid_f)      # (B*T, 4*h_p)

    # 2) recurrence: gates_t = x_proj[t] + h_{t-1} @ W_hh  (batch-first)
    h4 = x_proj.shape[1]
    t_pad = _time_pad_chunk(T)
    x_btc = x_proj.reshape(B, T, h4)
    if t_pad != T:
        x_btc = jnp.pad(x_btc, ((0, 0), (0, t_pad - T), (0, 0)))
    z = _lstm_forward(params, x_btc)                              # (B, t_pad, h_p)

    # 3) fused decoder: mean + var (= elu + 1); junk padded rows sliced off
    hp = z.shape[-1]
    mean_p, var_p = _decoder_forward(params, z.reshape(B * t_pad, hp))
    out_mean = mean_p[:, :td].reshape(B, t_pad, td)[:, :T]
    out_var = var_p[:, :td].reshape(B, t_pad, td)[:, :T]
    return out_mean, out_var


# --------------------------------------------------------------------------
# Demo
# --------------------------------------------------------------------------

if __name__ == "__main__":
    B, T = 2, 8
    obs_dim, act_dim, target_dim, lod = 12, 4, 12, 16

    key = jax.random.PRNGKey(0)
    k_p, k_obs, k_act, k_val = jax.random.split(key, 4)

    params = init_params(k_p, obs_dim, act_dim, target_dim, lod)

    obs_batch = jax.random.normal(k_obs, (B, T, obs_dim), jnp.float32)
    act_batch = jax.random.normal(k_act, (B, T, act_dim), jnp.float32)
    obs_valid_batch = (jax.random.uniform(k_val, (B, T, 1)) > 0.3)

    out_mean, out_var = lstm_baseline_forward(
        params, obs_batch, act_batch, obs_valid_batch)
    jax.block_until_ready((out_mean, out_var))

    assert out_mean.shape == (B, T, target_dim)
    assert out_var.shape == (B, T, target_dim)
    assert bool(jnp.all(out_var > 0.0))            # elu+1 variance is positive
    assert bool(jnp.all(jnp.isfinite(out_mean)))
    assert bool(jnp.all(jnp.isfinite(out_var)))

    print("KERNEL_OK")
</pallas_src>

<mosaic_0001>
module attributes {stable_mosaic.version = 11 : i64} {
  func.func @_encoder_kernel(%arg0: i32, %arg1: memref<16x12xf32, #tpu.memory_space<vmem>>, %arg2: memref<16x4xf32, #tpu.memory_space<vmem>>, %arg3: memref<16x1xf32, #tpu.memory_space<vmem>>, %arg4: memref<12x128xbf16, #tpu.memory_space<vmem>>, %arg5: memref<1x128xf32, #tpu.memory_space<vmem>>, %arg6: memref<128x128xbf16, #tpu.memory_space<vmem>>, %arg7: memref<1x128xf32, #tpu.memory_space<vmem>>, %arg8: memref<4x128xbf16, #tpu.memory_space<vmem>>, %arg9: memref<1x128xf32, #tpu.memory_space<vmem>>, %arg10: memref<128x128xbf16, #tpu.memory_space<vmem>>, %arg11: memref<1x128xf32, #tpu.memory_space<vmem>>, %arg12: memref<128x128xbf16, #tpu.memory_space<vmem>>, %arg13: memref<128x128xbf16, #tpu.memory_space<vmem>>, %arg14: memref<1x128xf32, #tpu.memory_space<vmem>>, %arg15: memref<128x128xbf16, #tpu.memory_space<vmem>>, %arg16: memref<1x128xf32, #tpu.memory_space<vmem>>, %arg17: memref<128x512xbf16, #tpu.memory_space<vmem>>, %arg18: memref<1x512xf32, #tpu.memory_space<vmem>>, %arg19: memref<16x512xbf16, #tpu.memory_space<vmem>>) attributes {dimension_semantics = [#tpu.dimension_semantics<parallel>], iteration_bounds = array<i64: 1>, scalar_prefetch = 0 : i64, scratch_operands = 0 : i64, tpu.core_type = #tpu.core_type<tc>, window_params = [{transform_indices = @transform_0, window_bounds = array<i64: 16, 12>}, {transform_indices = @transform_1, window_bounds = array<i64: 16, 4>}, {transform_indices = @transform_2, window_bounds = array<i64: 16, 1>}, {pipeline_mode = #tpu.pipeline_mode<synchronous>, transform_indices = @transform_3, window_bounds = array<i64: 12, 128>}, {pipeline_mode = #tpu.pipeline_mode<synchronous>, transform_indices = @transform_4, window_bounds = array<i64: 1, 128>}, {pipeline_mode = #tpu.pipeline_mode<synchronous>, transform_indices = @transform_5, window_bounds = array<i64: 128, 128>}, {pipeline_mode = #tpu.pipeline_mode<synchronous>, transform_indices = @transform_6, window_bounds = array<i64: 1, 128>}, {pipeline_mode = #tpu.pipeline_mode<synchronous>, transform_indices = @transform_7, window_bounds = array<i64: 4, 128>}, {pipeline_mode = #tpu.pipeline_mode<synchronous>, transform_indices = @transform_8, window_bounds = array<i64: 1, 128>}, {pipeline_mode = #tpu.pipeline_mode<synchronous>, transform_indices = @transform_9, window_bounds = array<i64: 128, 128>}, {pipeline_mode = #tpu.pipeline_mode<synchronous>, transform_indices = @transform_10, window_bounds = array<i64: 1, 128>}, {pipeline_mode = #tpu.pipeline_mode<synchronous>, transform_indices = @transform_11, window_bounds = array<i64: 128, 128>}, {pipeline_mode = #tpu.pipeline_mode<synchronous>, transform_indices = @transform_12, window_bounds = array<i64: 128, 128>}, {pipeline_mode = #tpu.pipeline_mode<synchronous>, transform_indices = @transform_13, window_bounds = array<i64: 1, 128>}, {pipeline_mode = #tpu.pipeline_mode<synchronous>, transform_indices = @transform_14, window_bounds = array<i64: 128, 128>}, {pipeline_mode = #tpu.pipeline_mode<synchronous>, transform_indices = @transform_15, window_bounds = array<i64: 1, 128>}, {pipeline_mode = #tpu.pipeline_mode<synchronous>, transform_indices = @transform_16, window_bounds = array<i64: 128, 512>}, {pipeline_mode = #tpu.pipeline_mode<synchronous>, transform_indices = @transform_17, window_bounds = array<i64: 1, 512>}, {transform_indices = @transform_18, window_bounds = array<i64: 16, 512>}]} {
    %c0 = arith.constant 0 : index
    %c0_0 = arith.constant 0 : index
    %0 = vector.load %arg1[%c0, %c0_0] : memref<16x12xf32, #tpu.memory_space<vmem>>, vector<16x12xf32>
    %c0_1 = arith.constant 0 : index
    %c0_2 = arith.constant 0 : index
    %1 = vector.load %arg3[%c0_1, %c0_2] : memref<16x1xf32, #tpu.memory_space<vmem>>, vector<16x1xf32>
    %2 = vector.broadcast %1 : vector<16x1xf32> to vector<16x12xf32>
    %3 = arith.mulf %0, %2 : vector<16x12xf32>
    %4 = arith.truncf %3 : vector<16x12xf32> to vector<16x12xbf16>
    %c0_3 = arith.constant 0 : index
    %c0_4 = arith.constant 0 : index
    %5 = vector.load %arg4[%c0_3, %c0_4] : memref<12x128xbf16, #tpu.memory_space<vmem>>, vector<12x128xbf16>
    %cst = arith.constant dense<0.000000e+00> : vector<16x128xf32>
    %6 = tpu.matmul %4, %5, %cst {dimension_numbers = #tpu.dot_dimension_numbers<[1], [0], [0], [1], [0, 0, 1, 1], [], []>} : vector<16x12xbf16>, vector<12x128xbf16>, vector<16x128xf32> -> vector<16x128xf32>
    %c0_5 = arith.constant 0 : index
    %c0_6 = arith.constant 0 : index
    %7 = vector.load %arg5[%c0_5, %c0_6] : memref<1x128xf32, #tpu.memory_space<vmem>>, vector<1x128xf32>
    %8 = vector.broadcast %7 : vector<1x128xf32> to vector<16x128xf32>
    %9 = arith.addf %6, %8 : vector<16x128xf32>
    %cst_7 = arith.constant 0.000000e+00 : f32
    %10 = vector.broadcast %cst_7 : f32 to vector<16x128xf32>
    %11 = arith.maximumf %9, %10 : vector<16x128xf32>
    %12 = arith.truncf %11 : vector<16x128xf32> to vector<16x128xbf16>
    %c0_8 = arith.constant 0 : index
    %c0_9 = arith.constant 0 : index
    %13 = vector.load %arg6[%c0_8, %c0_9] : memref<128x128xbf16, #tpu.memory_space<vmem>>, vector<128x128xbf16>
    %cst_10 = arith.constant dense<0.000000e+00> : vector<16x128xf32>
    %14 = tpu.matmul %12, %13, %cst_10 {dimension_numbers = #tpu.dot_dimension_numbers<[1], [0], [0], [1], [0, 0, 1, 1], [], []>} : vector<16x128xbf16>, vector<128x128xbf16>, vector<16x128xf32> -> vector<16x128xf32>
    %c0_11 = arith.constant 0 : index
    %c0_12 = arith.constant 0 : index
    %15 = vector.load %arg7[%c0_11, %c0_12] : memref<1x128xf32, #tpu.memory_space<vmem>>, vector<1x128xf32>
    %16 = vector.broadcast %15 : vector<1x128xf32> to vector<16x128xf32>
    %17 = arith.addf %14, %16 : vector<16x128xf32>
    %c0_13 = arith.constant 0 : index
    %c0_14 = arith.constant 0 : index
    %18 = vector.load %arg2[%c0_13, %c0_14] : memref<16x4xf32, #tpu.memory_space<vmem>>, vector<16x4xf32>
    %19 = arith.truncf %18 : vector<16x4xf32> to vector<16x4xbf16>
    %c0_15 = arith.constant 0 : index
    %c0_16 = arith.constant 0 : index
    %20 = vector.load %arg8[%c0_15, %c0_16] : memref<4x128xbf16, #tpu.memory_space<vmem>>, vector<4x128xbf16>
    %cst_17 = arith.constant dense<0.000000e+00> : vector<16x128xf32>
    %21 = tpu.matmul %19, %20, %cst_17 {dimension_numbers = #tpu.dot_dimension_numbers<[1], [0], [0], [1], [0, 0, 1, 1], [], []>} : vector<16x4xbf16>, vector<4x128xbf16>, vector<16x128xf32> -> vector<16x128xf32>
    %c0_18 = arith.constant 0 : index
    %c0_19 = arith.constant 0 : index
    %22 = vector.load %arg9[%c0_18, %c0_19] : memref<1x128xf32, #tpu.memory_space<vmem>>, vector<1x128xf32>
    %23 = vector.broadcast %22 : vector<1x128xf32> to vector<16x128xf32>
    %24 = arith.addf %21, %23 : vector<16x128xf32>
    %cst_20 = arith.constant 0.000000e+00 : f32
    %25 = vector.broadcast %cst_20 : f32 to vector<16x128xf32>
    %26 = arith.maximumf %24, %25 : vector<16x128xf32>
    %27 = arith.truncf %26 : vector<16x128xf32> to vector<16x128xbf16>
    %c0_21 = arith.constant 0 : index
    %c0_22 = arith.constant 0 : index
    %28 = vector.load %arg10[%c0_21, %c0_22] : memref<128x128xbf16, #tpu.memory_space<vmem>>, vector<128x128xbf16>
    %cst_23 = arith.constant dense<0.000000e+00> : vector<16x128xf32>
    %29 = tpu.matmul %27, %28, %cst_23 {dimension_numbers = #tpu.dot_dimension_numbers<[1], [0], [0], [1], [0, 0, 1, 1], [], []>} : vector<16x128xbf16>, vector<128x128xbf16>, vector<16x128xf32> -> vector<16x128xf32>
    %c0_24 = arith.constant 0 : index
    %c0_25 = arith.constant 0 : index
    %30 = vector.load %arg11[%c0_24, %c0_25] : memref<1x128xf32, #tpu.memory_space<vmem>>, vector<1x128xf32>
    %31 = vector.broadcast %30 : vector<1x128xf32> to vector<16x128xf32>
    %32 = arith.addf %29, %31 : vector<16x128xf32>
    %33 = arith.truncf %17 : vector<16x128xf32> to vector<16x128xbf16>
    %c0_26 = arith.constant 0 : index
    %c0_27 = arith.constant 0 : index
    %34 = vector.load %arg12[%c0_26, %c0_27] : memref<128x128xbf16, #tpu.memory_space<vmem>>, vector<128x128xbf16>
    %cst_28 = arith.constant dense<0.000000e+00> : vector<16x128xf32>
    %35 = tpu.matmul %33, %34, %cst_28 {dimension_numbers = #tpu.dot_dimension_numbers<[1], [0], [0], [1], [0, 0, 1, 1], [], []>} : vector<16x128xbf16>, vector<128x128xbf16>, vector<16x128xf32> -> vector<16x128xf32>
    %36 = arith.truncf %32 : vector<16x128xf32> to vector<16x128xbf16>
    %c0_29 = arith.constant 0 : index
    %c0_30 = arith.constant 0 : index
    %37 = vector.load %arg13[%c0_29, %c0_30] : memref<128x128xbf16, #tpu.memory_space<vmem>>, vector<128x128xbf16>
    %cst_31 = arith.constant dense<0.000000e+00> : vector<16x128xf32>
    %38 = tpu.matmul %36, %37, %cst_31 {dimension_numbers = #tpu.dot_dimension_numbers<[1], [0], [0], [1], [0, 0, 1, 1], [], []>} : vector<16x128xbf16>, vector<128x128xbf16>, vector<16x128xf32> -> vector<16x128xf32>
    %39 = arith.addf %35, %38 : vector<16x128xf32>
    %c0_32 = arith.constant 0 : index
    %c0_33 = arith.constant 0 : index
    %40 = vector.load %arg14[%c0_32, %c0_33] : memref<1x128xf32, #tpu.memory_space<vmem>>, vector<1x128xf32>
    %41 = vector.broadcast %40 : vector<1x128xf32> to vector<16x128xf32>
    %42 = arith.addf %39, %41 : vector<16x128xf32>
    %cst_34 = arith.constant 0.000000e+00 : f32
    %43 = vector.broadcast %cst_34 : f32 to vector<16x128xf32>
    %44 = arith.maximumf %42, %43 : vector<16x128xf32>
    %45 = arith.truncf %44 : vector<16x128xf32> to vector<16x128xbf16>
    %c0_35 = arith.constant 0 : index
    %c0_36 = arith.constant 0 : index
    %46 = vector.load %arg15[%c0_35, %c0_36] : memref<128x128xbf16, #tpu.memory_space<vmem>>, vector<128x128xbf16>
    %cst_37 = arith.constant dense<0.000000e+00> : vector<16x128xf32>
    %47 = tpu.matmul %45, %46, %cst_37 {dimension_numbers = #tpu.dot_dimension_numbers<[1], [0], [0], [1], [0, 0, 1, 1], [], []>} : vector<16x128xbf16>, vector<128x128xbf16>, vector<16x128xf32> -> vector<16x128xf32>
    %c0_38 = arith.constant 0 : index
    %c0_39 = arith.constant 0 : index
    %48 = vector.load %arg16[%c0_38, %c0_39] : memref<1x128xf32, #tpu.memory_space<vmem>>, vector<1x128xf32>
    %49 = vector.broadcast %48 : vector<1x128xf32> to vector<16x128xf32>
    %50 = arith.addf %47, %49 : vector<16x128xf32>
    %51 = arith.truncf %50 : vector<16x128xf32> to vector<16x128xbf16>
    %c0_40 = arith.constant 0 : index
    %c0_41 = arith.constant 0 : index
    %52 = vector.load %arg17[%c0_40, %c0_41] : memref<128x512xbf16, #tpu.memory_space<vmem>>, vector<128x512xbf16>
    %cst_42 = arith.constant dense<0.000000e+00> : vector<16x512xf32>
    %53 = tpu.matmul %51, %52, %cst_42 {dimension_numbers = #tpu.dot_dimension_numbers<[1], [0], [0], [1], [0, 0, 1, 1], [], []>} : vector<16x128xbf16>, vector<128x512xbf16>, vector<16x512xf32> -> vector<16x512xf32>
    %c0_43 = arith.constant 0 : index
    %c0_44 = arith.constant 0 : index
    %54 = vector.load %arg18[%c0_43, %c0_44] : memref<1x512xf32, #tpu.memory_space<vmem>>, vector<1x512xf32>
    %55 = vector.broadcast %54 : vector<1x512xf32> to vector<16x512xf32>
    %56 = arith.addf %53, %55 : vector<16x512xf32>
    %57 = arith.truncf %56 : vector<16x512xf32> to vector<16x512xbf16>
    %c0_45 = arith.constant 0 : index
    %c0_46 = arith.constant 0 : index
    %58 = vector.load %arg19[%c0_45, %c0_46] : memref<16x512xbf16, #tpu.memory_space<vmem>>, vector<16x512xbf16>
    tpu.vector_store %arg19[%c0_45, %c0_46], %57 {strides = array<i32>} : memref<16x512xbf16, #tpu.memory_space<vmem>>, vector<16x512xbf16>,
    return
  }
  func.func @transform_0(%arg0: i32) -> (i32, i32) {
    %c0_i32 = arith.constant 0 : i32
    %c0_i32_0 = arith.constant 0 : i32
    return %arg0, %c0_i32 : i32, i32
  }
  func.func @transform_1(%arg0: i32) -> (i32, i32) {
    %c0_i32 = arith.constant 0 : i32
    %c0_i32_0 = arith.constant 0 : i32
    return %arg0, %c0_i32 : i32, i32
  }
  func.func @transform_2(%arg0: i32) -> (i32, i32) {
    %c0_i32 = arith.constant 0 : i32
    %c0_i32_0 = arith.constant 0 : i32
    return %arg0, %c0_i32 : i32, i32
  }
  func.func @transform_3(%arg0: i32) -> (i32, i32) {
    %c0_i32 = arith.constant 0 : i32
    %c0_i32_0 = arith.constant 0 : i32
    %c0_i32_1 = arith.constant 0 : i32
    return %c0_i32, %c0_i32_0 : i32, i32
  }
  func.func @transform_4(%arg0: i32) -> (i32, i32) {
    %c0_i32 = arith.constant 0 : i32
    %c0_i32_0 = arith.constant 0 : i32
    %c0_i32_1 = arith.constant 0 : i32
    return %c0_i32, %c0_i32_0 : i32, i32
  }
  func.func @transform_5(%arg0: i32) -> (i32, i32) {
    %c0_i32 = arith.constant 0 : i32
    %c0_i32_0 = arith.constant 0 : i32
    %c0_i32_1 = arith.constant 0 : i32
    return %c0_i32, %c0_i32_0 : i32, i32
  }
  func.func @transform_6(%arg0: i32) -> (i32, i32) {
    %c0_i32 = arith.constant 0 : i32
    %c0_i32_0 = arith.constant 0 : i32
    %c0_i32_1 = arith.constant 0 : i32
    return %c0_i32, %c0_i32_0 : i32, i32
  }
  func.func @transform_7(%arg0: i32) -> (i32, i32) {
    %c0_i32 = arith.constant 0 : i32
    %c0_i32_0 = arith.constant 0 : i32
    %c0_i32_1 = arith.constant 0 : i32
    return %c0_i32, %c0_i32_0 : i32, i32
  }
  func.func @transform_8(%arg0: i32) -> (i32, i32) {
    %c0_i32 = arith.constant 0 : i32
    %c0_i32_0 = arith.constant 0 : i32
    %c0_i32_1 = arith.constant 0 : i32
    return %c0_i32, %c0_i32_0 : i32, i32
  }
  func.func @transform_9(%arg0: i32) -> (i32, i32) {
    %c0_i32 = arith.constant 0 : i32
    %c0_i32_0 = arith.constant 0 : i32
    %c0_i32_1 = arith.constant 0 : i32
    return %c0_i32, %c0_i32_0 : i32, i32
  }
  func.func @transform_10(%arg0: i32) -> (i32, i32) {
    %c0_i32 = arith.constant 0 : i32
    %c0_i32_0 = arith.constant 0 : i32
    %c0_i32_1 = arith.constant 0 : i32
    return %c0_i32, %c0_i32_0 : i32, i32
  }
  func.func @transform_11(%arg0: i32) -> (i32, i32) {
    %c0_i32 = arith.constant 0 : i32
    %c0_i32_0 = arith.constant 0 : i32
    %c0_i32_1 = arith.constant 0 : i32
    return %c0_i32, %c0_i32_0 : i32, i32
  }
  func.func @transform_12(%arg0: i32) -> (i32, i32) {
    %c0_i32 = arith.constant 0 : i32
    %c0_i32_0 = arith.constant 0 : i32
    %c0_i32_1 = arith.constant 0 : i32
    return %c0_i32, %c0_i32_0 : i32, i32
  }
  func.func @transform_13(%arg0: i32) -> (i32, i32) {
    %c0_i32 = arith.constant 0 : i32
    %c0_i32_0 = arith.constant 0 : i32
    %c0_i32_1 = arith.constant 0 : i32
    return %c0_i32, %c0_i32_0 : i32, i32
  }
  func.func @transform_14(%arg0: i32) -> (i32, i32) {
    %c0_i32 = arith.constant 0 : i32
    %c0_i32_0 = arith.constant 0 : i32
    %c0_i32_1 = arith.constant 0 : i32
    return %c0_i32, %c0_i32_0 : i32, i32
  }
  func.func @transform_15(%arg0: i32) -> (i32, i32) {
    %c0_i32 = arith.constant 0 : i32
    %c0_i32_0 = arith.constant 0 : i32
    %c0_i32_1 = arith.constant 0 : i32
    return %c0_i32, %c0_i32_0 : i32, i32
  }
  func.func @transform_16(%arg0: i32) -> (i32, i32) {
    %c0_i32 = arith.constant 0 : i32
    %c0_i32_0 = arith.constant 0 : i32
    %c0_i32_1 = arith.constant 0 : i32
    return %c0_i32, %c0_i32_0 : i32, i32
  }
  func.func @transform_17(%arg0: i32) -> (i32, i32) {
    %c0_i32 = arith.constant 0 : i32
    %c0_i32_0 = arith.constant 0 : i32
    %c0_i32_1 = arith.constant 0 : i32
    return %c0_i32, %c0_i32_0 : i32, i32
  }
  func.func @transform_18(%arg0: i32) -> (i32, i32) {
    %c0_i32 = arith.constant 0 : i32
    %c0_i32_0 = arith.constant 0 : i32
    return %arg0, %c0_i32 : i32, i32
  }
}

</mosaic_0001>

<bundles_post_ra>
// kernel: tpu_custom_call.1
= control target key start
LH: loop header
LB: loop body
LE: loop exit
PB: predicated region body
PF: predicated region fallthrough
CT: control target
= control target key end

     0   :  { %s2629_s0 = inlined_call_operand.hbm [shape: f32[16,12], index: 0, kind: input, shape index: {}]   ;;  %s2630_s1 = inlined_call_operand.hbm [shape: f32[16,4], index: 1, kind: input, shape index: {}]   ;;  %s2631_s2 = inlined_call_operand.hbm [shape: f32[16,1], index: 2, kind: input, shape index: {}]   ;;  %s2632_s3 = inlined_call_operand.hbm [shape: bf16[12,128], index: 3, kind: input, shape index: {}]   ;;  %s2633_s4 = inlined_call_operand.hbm [shape: f32[1,128], index: 4, kind: input, shape index: {}]   ;;  %s2634_s5 = inlined_call_operand.hbm [shape: bf16[128,128], index: 5, kind: input, shape index: {}]   ;;  %s2635_s6 = inlined_call_operand.hbm [shape: f32[1,128], index: 6, kind: input, shape index: {}]   ;;  %s2636_s7 = inlined_call_operand.hbm [shape: bf16[4,128], index: 7, kind: input, shape index: {}]   ;;  %s2637_s8 = inlined_call_operand.hbm [shape: f32[1,128], index: 8, kind: input, shape index: {}]   ;;  %s2638_s9 = inlined_call_operand.hbm [shape: bf16[128,128], index: 9, kind: input, shape index: {}]   ;;  %s2639_s10 = inlined_call_operand.hbm [shape: f32[1,128], index: 10, kind: input, shape index: {}]   ;;  %s2640_s11 = inlined_call_operand.hbm [shape: bf16[128,128], index: 11, kind: input, shape index: {}]   ;;  %s2641_s12 = inlined_call_operand.hbm [shape: bf16[128,128], index: 12, kind: input, shape index: {}]   ;;  %s2642_s13 = inlined_call_operand.hbm [shape: f32[1,128], index: 13, kind: input, shape index: {}]   ;;  %s2643_s14 = inlined_call_operand.hbm [shape: bf16[128,128], index: 14, kind: input, shape index: {}]   ;;  %s2644_s15 = inlined_call_operand.hbm [shape: f32[1,128], index: 15, kind: input, shape index: {}]   ;;  %s2645_s16 = inlined_call_operand.hbm [shape: bf16[128,512], index: 16, kind: input, shape index: {}]   ;;  %s2646_s17 = inlined_call_operand.hbm [shape: f32[1,512], index: 17, kind: input, shape index: {}]   ;;  %s2647_s18 = inlined_call_operand.hbm [shape: bf16[16,512], index: 18, kind: output, shape index: {}]  }
   0x1   :  { %2656 = sst [smem:[#allocation43_spill]] %s2629_s0 }
   0x2   :  { %2657 = sst [smem:[#allocation44_spill]] %s2630_s1 }
   0x3   :  { %2658 = sst [smem:[#allocation45_spill]] %s2631_s2 }
   0x4   :  { %2659 = sst [smem:[#allocation46_spill]] %s2647_s18 }
   0x5   :  { %23 = vsyncpa [#allocation3], 0 }
   0x6   :  { %24 = vsyncpa [#allocation6], 0 }
   0x7   :  { %25 = vsyncpa [#allocation9], 0 }
   0x8   :  { %26 = vsyncpa [#allocation12], 0 }
   0x9   :  { %27 = vsyncpa [#allocation15], 0 }
   0xa   :  { %28 = vsyncpa [#allocation18], 0 }
   0xb   :  { %29 = vsyncpa [#allocation21], 0 }
   0xc   :  { %30 = vsyncpa [#allocation24], 0 }
   0xd   :  { %31 = vsyncpa [#allocation27], 0 }
   0xe   :  { %32 = vsyncpa [#allocation30], 0 }
   0xf   :  { %33 = vsyncpa [#allocation4], 0  ;;  %s2158_s27 = smov [#allocation5]   ;;  %s2159_s29 = smov [#allocation8]  }
  0x10   :  { %s51_s28 = sshll.u32 %s2158_s27, 4  ;;  %s75_s30 = sshll.u32 %s2159_s29, 4  ;;  %s52_s28 = int_to_ptr.vmem [resolvable:$true] %s51_s28  ;;  %s2281_s30 = int_to_ptr.vmem [resolvable:$true] %s75_s30 }
  0x11   :  { %s2660_s1 = sld [smem:[#allocation44_spill]] }
  0x17   :  { %s1718_s20 = scalar_lea.hbm %s2660_s1, 256 }
  0x18   :  { %p1719_p0 = scmp.ne.s32.totalorder %s2660_s1, %s1718_s20  ;;  %p1722_p1 = scmp.lt.u32.totalorder %s1718_s20, %s2660_s1 }
  0x1a   :  { %p1724_p2 = pnand %p1722_p1, %p1719_p0 }
  0x1c   :  { %1727 = shalt.err (!%p1724_p2)
}
  0x1d   :  { %s1728_s24 = scalar_lea.vmem %s52_s28, 256  ;;  %p1733_p4 = scmp.lt.s32.totalorder %s52_s28, %s52_s28 }
  0x1e   :  { %p1729_p3 = scmp.ne.s32.totalorder %s52_s28, %s1728_s24  ;;  %p1734_p5 = scmp.lt.s32.totalorder %s1728_s24, %s1728_s24 }
  0x20   :  { %p1735_p6 = por %p1734_p5, %p1733_p4 }
  0x22   :  { %p1736_p7 = pnand %p1735_p6, %p1729_p3 }
  0x24   :  { %1739 = shalt.err (!%p1736_p7)
}
  0x25   :  { %s2651_s25 = smov 128   ;;  %s2653_s26 = smov 8  }
  0x26   :  { %57 = dma.hbm_to_vmem [thread:$0]  %s2660_s1, 256, %s52_s28, [#allocation6], %s2651_s25, %s2651_s25, %s2653_s26  }
  0x27   :  { %s1740_s20 = scalar_lea.hbm %s2632_s3, 128 }
  0x28   :  { %p1741_p8 = scmp.ne.s32.totalorder %s2632_s3, %s1740_s20  ;;  %p1744_p9 = scmp.lt.u32.totalorder %s1740_s20, %s2632_s3 }
  0x2a   :  { %p1746_p10 = pnand %p1744_p9, %p1741_p8 }
  0x2c   :  { %1749 = shalt.err (!%p1746_p10)
}
  0x2d   :  { %s1750_s24 = scalar_lea.vmem %s2281_s30, 128  ;;  %p1755_p12 = scmp.lt.s32.totalorder %s2281_s30, %s2281_s30 }
  0x2e   :  { %p1751_p11 = scmp.ne.s32.totalorder %s2281_s30, %s1750_s24  ;;  %p1756_p13 = scmp.lt.s32.totalorder %s1750_s24, %s1750_s24 }
  0x30   :  { %p1757_p0 = por %p1756_p13, %p1755_p12 }
  0x32   :  { %p1758_p1 = pnand %p1757_p0, %p1751_p11 }
  0x34   :  { %1761 = shalt.err (!%p1758_p1)
}
  0x35   :  { %s2162_s28 = smov 64   ;;  %s2163_s1 = smov 4  }
  0x36   :  { %81 = dma.hbm_to_vmem [thread:$0]  %s2632_s3, 128, %s2281_s30, [#allocation9], %s2162_s28, %s2162_s28, %s2163_s1  }
  0x37   :  { %s2164_s0 = smov [#allocation11]   ;;  %s2165_s20 = smov [#allocation14]  }
  0x38   :  { %s97_s19 = sshll.u32 %s2164_s0, 4  ;;  %s120_s21 = sshll.u32 %s2165_s20, 4  ;;  %s98_s19 = int_to_ptr.vmem [resolvable:$true] %s97_s19  ;;  %s121_s21 = int_to_ptr.vmem [resolvable:$true] %s120_s21 }
  0x39   :  { %s1762_s23 = scalar_lea.hbm %s2634_s5, 1024 }
  0x3a   :  { %p1763_p2 = scmp.ne.s32.totalorder %s2634_s5, %s1762_s23  ;;  %p1766_p3 = scmp.lt.u32.totalorder %s1762_s23, %s2634_s5 }
  0x3c   :  { %p1768_p4 = pnand %p1766_p3, %p1763_p2 }
  0x3e   :  { %1771 = shalt.err (!%p1768_p4)
}
  0x3f   :  { %s1772_s3 = scalar_lea.vmem %s98_s19, 1024  ;;  %p1777_p6 = scmp.lt.s32.totalorder %s98_s19, %s98_s19 }
  0x40   :  { %p1773_p5 = scmp.ne.s32.totalorder %s98_s19, %s1772_s3  ;;  %p1778_p7 = scmp.lt.s32.totalorder %s1772_s3, %s1772_s3 }
  0x42   :  { %p1779_p8 = por %p1778_p7, %p1777_p6 }
  0x44   :  { %p1780_p9 = pnand %p1779_p8, %p1773_p5 }
  0x46   :  { %1783 = shalt.err (!%p1780_p9)
}
  0x47   :  { %103 = dma.hbm_to_vmem [thread:$0]  %s2634_s5, 1024, %s98_s19, [#allocation12], %s2162_s28, %s2162_s28, %s2163_s1  }
  0x48   :  { %s1784_s18 = scalar_lea.hbm %s2636_s7, 32 }
  0x49   :  { %p1785_p10 = scmp.ne.s32.totalorder %s2636_s7, %s1784_s18  ;;  %p1788_p11 = scmp.lt.u32.totalorder %s1784_s18, %s2636_s7 }
  0x4b   :  { %p1790_p12 = pnand %p1788_p11, %p1785_p10 }
  0x4d   :  { %1793 = shalt.err (!%p1790_p12)
}
  0x4e   :  { %s1794_s2 = scalar_lea.vmem %s121_s21, 32  ;;  %p1799_p0 = scmp.lt.s32.totalorder %s121_s21, %s121_s21 }
  0x4f   :  { %p1795_p13 = scmp.ne.s32.totalorder %s121_s21, %s1794_s2  ;;  %p1800_p1 = scmp.lt.s32.totalorder %s1794_s2, %s1794_s2 }
  0x51   :  { %p1801_p2 = por %p1800_p1, %p1799_p0 }
  0x53   :  { %p1802_p3 = pnand %p1801_p2, %p1795_p13 }
  0x55   :  { %1805 = shalt.err (!%p1802_p3)
}
  0x56   :  { %123 = dma.hbm_to_vmem [thread:$0]  %s2636_s7, 32, %s121_s21, [#allocation15]  }
  0x57   :  { %s2166_s23 = smov [#allocation17]   ;;  %s2167_s3 = smov [#allocation20]  }
  0x58   :  { %s139_s24 = sshll.u32 %s2166_s23, 4  ;;  %s161_s30 = sshll.u32 %s2167_s3, 4  ;;  %s140_s24 = int_to_ptr.vmem [resolvable:$true] %s139_s24  ;;  %s2345_s30 = int_to_ptr.vmem [resolvable:$true] %s161_s30 }
  0x59   :  { %s1806_s29 = scalar_lea.hbm %s2638_s9, 1024 }
  0x5a   :  { %p1807_p4 = scmp.ne.s32.totalorder %s2638_s9, %s1806_s29  ;;  %p1810_p5 = scmp.lt.u32.totalorder %s1806_s29, %s2638_s9 }
  0x5c   :  { %p1812_p6 = pnand %p1810_p5, %p1807_p4 }
  0x5e   :  { %1815 = shalt.err (!%p1812_p6)
}
  0x5f   :  { %s1816_s7 = scalar_lea.vmem %s140_s24, 1024  ;;  %p1821_p8 = scmp.lt.s32.totalorder %s140_s24, %s140_s24 }
  0x60   :  { %p1817_p7 = scmp.ne.s32.totalorder %s140_s24, %s1816_s7  ;;  %p1822_p9 = scmp.lt.s32.totalorder %s1816_s7, %s1816_s7 }
  0x62   :  { %p1823_p10 = por %p1822_p9, %p1821_p8 }
  0x64   :  { %p1824_p11 = pnand %p1823_p10, %p1817_p7 }
  0x66   :  { %1827 = shalt.err (!%p1824_p11)
}
  0x67   :  { %145 = dma.hbm_to_vmem [thread:$0]  %s2638_s9, 1024, %s140_s24, [#allocation18], %s2162_s28, %s2162_s28, %s2163_s1  }
  0x68   :  { %s1828_s19 = scalar_lea.hbm %s2640_s11, 1024 }
  0x69   :  { %p1829_p12 = scmp.ne.s32.totalorder %s2640_s11, %s1828_s19  ;;  %p1832_p13 = scmp.lt.u32.totalorder %s1828_s19, %s2640_s11 }
  0x6b   :  { %p1834_p0 = pnand %p1832_p13, %p1829_p12 }
  0x6d   :  { %1837 = shalt.err (!%p1834_p0)
}
  0x6e   :  { %s1838_s29 = scalar_lea.vmem %s2345_s30, 1024  ;;  %p1843_p2 = scmp.lt.s32.totalorder %s2345_s30, %s2345_s30 }
  0x6f   :  { %p1839_p1 = scmp.ne.s32.totalorder %s2345_s30, %s1838_s29  ;;  %p1844_p3 = scmp.lt.s32.totalorder %s1838_s29, %s1838_s29 }
  0x71   :  { %p1845_p4 = por %p1844_p3, %p1843_p2 }
  0x73   :  { %p1846_p5 = pnand %p1845_p4, %p1839_p1 }
  0x75   :  { %1849 = shalt.err (!%p1846_p5)
}
  0x76   :  { %167 = dma.hbm_to_vmem [thread:$0]  %s2640_s11, 1024, %s2345_s30, [#allocation21], %s2162_s28, %s2162_s28, %s2163_s1  }
  0x77   :  { %s2168_s18 = smov [#allocation23]   ;;  %s2169_s0 = smov [#allocation26]  }
  0x78   :  { %s186_s26 = sshll.u32 %s2168_s18, 4  ;;  %s208_s20 = sshll.u32 %s2169_s0, 4  ;;  %s187_s26 = int_to_ptr.vmem [resolvable:$true] %s186_s26  ;;  %s209_s20 = int_to_ptr.vmem [resolvable:$true] %s208_s20 }
  0x79   :  { %s1850_s22 = scalar_lea.hbm %s2642_s13, 16 }
  0x7a   :  { %p1851_p6 = scmp.ne.s32.totalorder %s2642_s13, %s1850_s22  ;;  %p1854_p7 = scmp.lt.u32.totalorder %s1850_s22, %s2642_s13 }
  0x7c   :  { %p1856_p8 = pnand %p1854_p7, %p1851_p6 }
  0x7e   :  { %1859 = shalt.err (!%p1856_p8)
}
  0x7f   :  { %s1860_s11 = scalar_lea.vmem %s187_s26, 16  ;;  %s1864_s30 = scalar_lea.vmem %s187_s26, 32 }
  0x80   :  { %p1861_p9 = scmp.ne.s32.totalorder %s187_s26, %s1860_s11  ;;  %p1865_p10 = scmp.lt.s32.totalorder %s187_s26, %s187_s26 }
  0x81   :  { %p1866_p11 = scmp.lt.s32.totalorder %s1864_s30, %s1860_s11 }
  0x83   :  { %p1867_p12 = por %p1866_p11, %p1865_p10 }
  0x85   :  { %p1868_p13 = pnand %p1867_p12, %p1861_p9 }
  0x87   :  { %1871 = shalt.err (!%p1868_p13)
}
  0x88   :  { %189 = dma.hbm_to_vmem [thread:$0]  %s2642_s13, 16, %s187_s26, [#allocation24]  }
  0x89   :  { %s1872_s9 = scalar_lea.hbm %s2644_s15, 16 }
  0x8a   :  { %p1873_p0 = scmp.ne.s32.totalorder %s2644_s15, %s1872_s9  ;;  %p1876_p1 = scmp.lt.u32.totalorder %s1872_s9, %s2644_s15 }
  0x8c   :  { %p1878_p2 = pnand %p1876_p1, %p1873_p0 }
  0x8e   :  { %1881 = shalt.err (!%p1878_p2)
}
  0x8f   :  { %s1882_s21 = scalar_lea.vmem %s209_s20, 16  ;;  %s1886_s22 = scalar_lea.vmem %s209_s20, 32 }
  0x90   :  { %p1883_p3 = scmp.ne.s32.totalorder %s209_s20, %s1882_s21  ;;  %p1887_p4 = scmp.lt.s32.totalorder %s209_s20, %s209_s20 }
  0x91   :  { %p1888_p5 = scmp.lt.s32.totalorder %s1886_s22, %s1882_s21 }
  0x93   :  { %p1889_p6 = por %p1888_p5, %p1887_p4 }
  0x95   :  { %p1890_p7 = pnand %p1889_p6, %p1883_p3 }
  0x97   :  { %1893 = shalt.err (!%p1890_p7)
}
  0x98   :  { %211 = dma.hbm_to_vmem [thread:$0]  %s2644_s15, 16, %s209_s20, [#allocation27]  }
  0x99   :  { %s2170_s2 = smov [#allocation2]   ;;  %s2171_s19 = smov [#allocation7]  }
  0x9a   :  { %s39_s5 = sshll.u32 %s2170_s2, 4  ;;  %s63_s23 = sshll.u32 %s2171_s19, 4  ;;  %s40_s5 = int_to_ptr.vmem [resolvable:$true] %s39_s5  ;;  %s2406_s23 = int_to_ptr.vmem [resolvable:$true] %s63_s23 }
  0x9b   :  { %s2661_s3 = sld [smem:[#allocation43_spill]] }
  0xa1   :  { %s1894_s27 = scalar_lea.hbm %s2661_s3, 256 }
  0xa2   :  { %p1895_p8 = scmp.ne.s32.totalorder %s2661_s3, %s1894_s27  ;;  %p1898_p9 = scmp.lt.u32.totalorder %s1894_s27, %s2661_s3 }
  0xa4   :  { %p1900_p10 = pnand %p1898_p9, %p1895_p8 }
  0xa6   :  { %1903 = shalt.err (!%p1900_p10)
}
  0xa7   :  { %s1904_s15 = scalar_lea.vmem %s40_s5, 256  ;;  %p1909_p12 = scmp.lt.s32.totalorder %s40_s5, %s40_s5 }
  0xa8   :  { %p1905_p11 = scmp.ne.s32.totalorder %s40_s5, %s1904_s15  ;;  %p1910_p13 = scmp.lt.s32.totalorder %s1904_s15, %s1904_s15 }
  0xaa   :  { %p1911_p0 = por %p1910_p13, %p1909_p12 }
  0xac   :  { %p1912_p1 = pnand %p1911_p0, %p1905_p11 }
  0xae   :  { %1915 = shalt.err (!%p1912_p1)
}
  0xaf   :  { %s2662_s20 = smov 8   ;;  %s2663_s18 = smov 128  }
  0xb0   :  { %45 = dma.hbm_to_vmem [thread:$0]  %s2661_s3, 256, %s40_s5, [#allocation3], %s2663_s18, %s2663_s18, %s2662_s20  }
  0xb1   :  { %s2664_s13 = sld [smem:[#allocation45_spill]] }
  0xb7   :  { %s1916_s26 = scalar_lea.hbm %s2664_s13, 256 }
  0xb8   :  { %p1917_p2 = scmp.ne.s32.totalorder %s2664_s13, %s1916_s26  ;;  %p1920_p3 = scmp.lt.u32.totalorder %s1916_s26, %s2664_s13 }
  0xba   :  { %p1922_p4 = pnand %p1920_p3, %p1917_p2 }
  0xbc   :  { %1925 = shalt.err (!%p1922_p4)
}
  0xbd   :  { %s1926_s27 = scalar_lea.vmem %s2406_s23, 256  ;;  %p1931_p6 = scmp.lt.s32.totalorder %s2406_s23, %s2406_s23 }
  0xbe   :  { %p1927_p5 = scmp.ne.s32.totalorder %s2406_s23, %s1926_s27  ;;  %p1932_p7 = scmp.lt.s32.totalorder %s1926_s27, %s1926_s27 }
  0xc0   :  { %p1933_p8 = por %p1932_p7, %p1931_p6 }
  0xc2   :  { %p1934_p9 = pnand %p1933_p8, %p1927_p5 }
  0xc4   :  { %1937 = shalt.err (!%p1934_p9)
}
  0xc5   :  { %69 = dma.hbm_to_vmem [thread:$0]  %s2664_s13, 256, %s2406_s23, [#allocation6], %s2663_s18, %s2663_s18, %s2662_s20  }
  0xc6   :  { %s2172_s25 = smov [#allocation10]   ;;  %s2173_s9 = smov [#allocation13]  }
  0xc7   :  { %s88_s29 = sshll.u32 %s2172_s25, 4  ;;  %s110_s24 = sshll.u32 %s2173_s9, 4  ;;  %s89_s29 = int_to_ptr.vmem [resolvable:$true] %s88_s29  ;;  %s111_s24 = int_to_ptr.vmem [resolvable:$true] %s110_s24 }
  0xc8   :  { %s1938_s7 = scalar_lea.hbm %s2633_s4, 16 }
  0xc9   :  { %p1939_p10 = scmp.ne.s32.totalorder %s2633_s4, %s1938_s7  ;;  %p1942_p11 = scmp.lt.u32.totalorder %s1938_s7, %s2633_s4 }
  0xcb   :  { %p1944_p12 = pnand %p1942_p11, %p1939_p10 }
  0xcd   :  { %1947 = shalt.err (!%p1944_p12)
}
  0xce   :  { %s1948_s23 = scalar_lea.vmem %s89_s29, 16  ;;  %s1952_s20 = scalar_lea.vmem %s89_s29, 32 }
  0xcf   :  { %p1949_p13 = scmp.ne.s32.totalorder %s89_s29, %s1948_s23  ;;  %p1953_p0 = scmp.lt.s32.totalorder %s89_s29, %s89_s29 }
  0xd0   :  { %p1954_p1 = scmp.lt.s32.totalorder %s1952_s20, %s1948_s23 }
  0xd2   :  { %p1955_p2 = por %p1954_p1, %p1953_p0 }
  0xd4   :  { %p1956_p3 = pnand %p1955_p2, %p1949_p13 }
  0xd6   :  { %1959 = shalt.err (!%p1956_p3)
}
  0xd7   :  { %91 = dma.hbm_to_vmem [thread:$0]  %s2633_s4, 16, %s89_s29, [#allocation9]  }
  0xd8   :  { %s1960_s30 = scalar_lea.hbm %s2635_s6, 16 }
  0xd9   :  { %p1961_p4 = scmp.ne.s32.totalorder %s2635_s6, %s1960_s30  ;;  %p1964_p5 = scmp.lt.u32.totalorder %s1960_s30, %s2635_s6 }
  0xdb   :  { %p1966_p6 = pnand %p1964_p5, %p1961_p4 }
  0xdd   :  { %1969 = shalt.err (!%p1966_p6)
}
  0xde   :  { %s1970_s9 = scalar_lea.vmem %s111_s24, 16  ;;  %s1974_s15 = scalar_lea.vmem %s111_s24, 32 }
  0xdf   :  { %p1971_p7 = scmp.ne.s32.totalorder %s111_s24, %s1970_s9  ;;  %p1975_p8 = scmp.lt.s32.totalorder %s111_s24, %s111_s24 }
  0xe0   :  { %p1976_p9 = scmp.lt.s32.totalorder %s1974_s15, %s1970_s9 }
  0xe2   :  { %p1977_p10 = por %p1976_p9, %p1975_p8 }
  0xe4   :  { %p1978_p11 = pnand %p1977_p10, %p1971_p7 }
  0xe6   :  { %1981 = shalt.err (!%p1978_p11)
}
  0xe7   :  { %113 = dma.hbm_to_vmem [thread:$0]  %s2635_s6, 16, %s111_s24, [#allocation12]  }
  0xe8   :  { %s2174_s0 = smov [#allocation16]   ;;  %s2175_s21 = smov [#allocation19]  }
  0xe9   :  { %s130_s7 = sshll.u32 %s2174_s0, 4  ;;  %s152_s22 = sshll.u32 %s2175_s21, 4  ;;  %s131_s7 = int_to_ptr.vmem [resolvable:$true] %s130_s7  ;;  %s153_s22 = int_to_ptr.vmem [resolvable:$true] %s152_s22 }
  0xea   :  { %s1982_s23 = scalar_lea.hbm %s2637_s8, 16 }
  0xeb   :  { %p1983_p12 = scmp.ne.s32.totalorder %s2637_s8, %s1982_s23  ;;  %p1986_p13 = scmp.lt.u32.totalorder %s1982_s23, %s2637_s8 }
  0xed   :  { %p1988_p0 = pnand %p1986_p13, %p1983_p12 }
  0xef   :  { %1991 = shalt.err (!%p1988_p0)
}
  0xf0   :  { %s1992_s6 = scalar_lea.vmem %s131_s7, 16  ;;  %s1996_s24 = scalar_lea.vmem %s131_s7, 32 }
  0xf1   :  { %p1993_p1 = scmp.ne.s32.totalorder %s131_s7, %s1992_s6  ;;  %p1997_p2 = scmp.lt.s32.totalorder %s131_s7, %s131_s7 }
  0xf2   :  { %p1998_p3 = scmp.lt.s32.totalorder %s1996_s24, %s1992_s6 }
  0xf4   :  { %p1999_p4 = por %p1998_p3, %p1997_p2 }
  0xf6   :  { %p2000_p5 = pnand %p1999_p4, %p1993_p1 }
  0xf8   :  { %2003 = shalt.err (!%p2000_p5)
}
  0xf9   :  { %133 = dma.hbm_to_vmem [thread:$0]  %s2637_s8, 16, %s131_s7, [#allocation15]  }
  0xfa   :  { %s2004_s3 = scalar_lea.hbm %s2639_s10, 16 }
  0xfb   :  { %p2005_p6 = scmp.ne.s32.totalorder %s2639_s10, %s2004_s3  ;;  %p2008_p7 = scmp.lt.u32.totalorder %s2004_s3, %s2639_s10 }
  0xfd   :  { %p2010_p8 = pnand %p2008_p7, %p2005_p6 }
  0xff   :  { %2013 = shalt.err (!%p2010_p8)
}
 0x100   :  { %s2014_s29 = scalar_lea.vmem %s153_s22, 16  ;;  %s2018_s0 = scalar_lea.vmem %s153_s22, 32 }
 0x101   :  { %p2015_p9 = scmp.ne.s32.totalorder %s153_s22, %s2014_s29  ;;  %p2019_p10 = scmp.lt.s32.totalorder %s153_s22, %s153_s22 }
 0x102   :  { %p2020_p11 = scmp.lt.s32.totalorder %s2018_s0, %s2014_s29 }
 0x104   :  { %p2021_p12 = por %p2020_p11, %p2019_p10 }
 0x106   :  { %p2022_p13 = pnand %p2021_p12, %p2015_p9 }
 0x108   :  { %2025 = shalt.err (!%p2022_p13)
}
 0x109   :  { %155 = dma.hbm_to_vmem [thread:$0]  %s2639_s10, 16, %s153_s22, [#allocation18]  }
 0x10a   :  { %s2176_s21 = smov [#allocation22]   ;;  %s2177_s2 = smov [#allocation25]  }
 0x10b   :  { %s173_s26 = sshll.u32 %s2176_s21, 4  ;;  %s195_s23 = sshll.u32 %s2177_s2, 4  ;;  %s174_s26 = int_to_ptr.vmem [resolvable:$true] %s173_s26  ;;  %s2491_s23 = int_to_ptr.vmem [resolvable:$true] %s195_s23 }
 0x10c   :  { %s2026_s13 = scalar_lea.hbm %s2641_s12, 1024 }
 0x10d   :  { %p2027_p0 = scmp.ne.s32.totalorder %s2641_s12, %s2026_s13  ;;  %p2030_p1 = scmp.lt.u32.totalorder %s2026_s13, %s2641_s12 }
 0x10f   :  { %p2032_p2 = pnand %p2030_p1, %p2027_p0 }
 0x111   :  { %2035 = shalt.err (!%p2032_p2)
}
 0x112   :  { %s2036_s10 = scalar_lea.vmem %s174_s26, 1024  ;;  %p2041_p4 = scmp.lt.s32.totalorder %s174_s26, %s174_s26 }
 0x113   :  { %p2037_p3 = scmp.ne.s32.totalorder %s174_s26, %s2036_s10  ;;  %p2042_p5 = scmp.lt.s32.totalorder %s2036_s10, %s2036_s10 }
 0x115   :  { %p2043_p6 = por %p2042_p5, %p2041_p4 }
 0x117   :  { %p2044_p7 = pnand %p2043_p6, %p2037_p3 }
 0x119   :  { %2047 = shalt.err (!%p2044_p7)
}
 0x11a   :  { %179 = dma.hbm_to_vmem [thread:$0]  %s2641_s12, 1024, %s174_s26, [#allocation21], %s2162_s28, %s2162_s28, %s2163_s1  }
 0x11b   :  { %s2048_s3 = scalar_lea.hbm %s2643_s14, 1024 }
 0x11c   :  { %p2049_p8 = scmp.ne.s32.totalorder %s2643_s14, %s2048_s3  ;;  %p2052_p9 = scmp.lt.u32.totalorder %s2048_s3, %s2643_s14 }
 0x11e   :  { %p2054_p10 = pnand %p2052_p9, %p2049_p8 }
 0x120   :  { %2057 = shalt.err (!%p2054_p10)
}
 0x121   :  { %s2058_s29 = scalar_lea.vmem %s2491_s23, 1024  ;;  %p2063_p12 = scmp.lt.s32.totalorder %s2491_s23, %s2491_s23 }
 0x122   :  { %p2059_p11 = scmp.ne.s32.totalorder %s2491_s23, %s2058_s29  ;;  %p2064_p13 = scmp.lt.s32.totalorder %s2058_s29, %s2058_s29 }
 0x124   :  { %p2065_p0 = por %p2064_p13, %p2063_p12 }
 0x126   :  { %p2066_p1 = pnand %p2065_p0, %p2059_p11 }
 0x128   :  { %2069 = shalt.err (!%p2066_p1)
}
 0x129   :  { %201 = dma.hbm_to_vmem [thread:$0]  %s2643_s14, 1024, %s2491_s23, [#allocation24], %s2162_s28, %s2162_s28, %s2163_s1  }
 0x12a   :  { %s2178_s8 = smov [#allocation28]   ;;  %s2070_s2 = scalar_lea.hbm %s2645_s16, 4096 }
 0x12b   :  { %s217_s7 = sshll.u32 %s2178_s8, 4  ;;  %p2071_p2 = scmp.ne.s32.totalorder %s2645_s16, %s2070_s2  ;;  %s218_s7 = int_to_ptr.vmem [resolvable:$true] %s217_s7 }
 0x12c   :  { %p2074_p3 = scmp.lt.u32.totalorder %s2070_s2, %s2645_s16 }
 0x12e   :  { %p2076_p4 = pnand %p2074_p3, %p2071_p2 }
 0x130   :  { %2079 = shalt.err (!%p2076_p4)
}
 0x131   :  { %s2080_s6 = scalar_lea.vmem %s218_s7, 4096  ;;  %p2085_p6 = scmp.lt.s32.totalorder %s218_s7, %s218_s7 }
 0x132   :  { %p2081_p5 = scmp.ne.s32.totalorder %s218_s7, %s2080_s6  ;;  %p2086_p7 = scmp.lt.s32.totalorder %s2080_s6, %s2080_s6 }
 0x134   :  { %p2087_p8 = por %p2086_p7, %p2085_p6 }
 0x136   :  { %p2088_p9 = pnand %p2087_p8, %p2081_p5 }
 0x138   :  { %2091 = shalt.err (!%p2088_p9)
}
 0x139   :  { %s2179_s14 = smov 256   ;;  %s2180_s28 = smov 16  }
 0x13a   :  { %223 = dma.hbm_to_vmem [thread:$0]  %s2645_s16, 4096, %s218_s7, [#allocation27], %s2179_s14, %s2179_s14, %s2180_s28  }
 0x13b   :  { %s2181_s24 = smov [#allocation29]   ;;  %s2092_s30 = scalar_lea.hbm %s2646_s17, 64 }
 0x13c   :  { %s230_s11 = sshll.u32 %s2181_s24, 4  ;;  %p2093_p10 = scmp.ne.s32.totalorder %s2646_s17, %s2092_s30  ;;  %s231_s11 = int_to_ptr.vmem [resolvable:$true] %s230_s11 }
 0x13d   :  { %p2096_p11 = scmp.lt.u32.totalorder %s2092_s30, %s2646_s17 }
 0x13f   :  { %p2098_p12 = pnand %p2096_p11, %p2093_p10 }
 0x141   :  { %2101 = shalt.err (!%p2098_p12)
}
 0x142   :  { %s2102_s9 = scalar_lea.vmem %s231_s11, 64  ;;  %p2107_p0 = scmp.lt.s32.totalorder %s231_s11, %s231_s11 }
 0x143   :  { %p2103_p13 = scmp.ne.s32.totalorder %s231_s11, %s2102_s9  ;;  %p2108_p1 = scmp.lt.s32.totalorder %s2102_s9, %s2102_s9 }
 0x145   :  { %p2109_p2 = por %p2108_p1, %p2107_p0 }
 0x147   :  { %p2110_p3 = pnand %p2109_p2, %p2103_p13 }
 0x149   :  { %2113 = shalt.err (!%p2110_p3)
}
 0x14a   :  { %233 = dma.hbm_to_vmem [thread:$0]  %s2646_s17, 64, %s231_s11, [#allocation30]  }
 0x14b   :  { %2136 = dma.done.wait [#allocation3], 256  }
 0x14c   :  { %2137 = vsyncadd [#allocation3], 4294967040 }
 0x14d   :  { %2138 = dma.done.wait [#allocation6], 512  }
 0x14e   :  { %2139 = vsyncadd [#allocation6], 4294966784 }
 0x14f   :  { %2140 = dma.done.wait [#allocation9], 144  }
 0x150   :  { %2141 = vsyncadd [#allocation9], 4294967152 }
 0x151   :  { %2142 = dma.done.wait [#allocation12], 1040  }
 0x152   :  { %2143 = vsyncadd [#allocation12], 4294966256 }
 0x153   :  { %2144 = dma.done.wait [#allocation15], 48  }
 0x154   :  { %2145 = vsyncadd [#allocation15], 4294967248 }
 0x155   :  { %2146 = dma.done.wait [#allocation18], 1040  }
 0x156   :  { %2147 = vsyncadd [#allocation18], 4294966256 }
 0x157   :  { %2148 = dma.done.wait [#allocation21], 2048  }
 0x158   :  { %2149 = vsyncadd [#allocation21], 4294965248 }
 0x159   :  { %2150 = dma.done.wait [#allocation24], 1040  }
 0x15a   :  { %2151 = vsyncadd [#allocation24], 4294966256 }
 0x15b   :  { %2152 = dma.done.wait [#allocation27], 4112  }
 0x15c   :  { %2153 = vsyncadd [#allocation27], 4294963184 }
 0x15d   :  { %2154 = dma.done.wait [#allocation30], 64  }
 0x15e   :  { %2155 = vsyncadd [#allocation30], 4294967232  ;;  %v2182_v0 = vmov 0   ;;  %v291_v1 = vld [vmem:[#allocation7] sm:$0xff]  ;;  %v292_v2 = vld [vmem:[#allocation7 + $0x8] sm:$0xff]  ;;  %v2183_v3 = vmov 0.0  }
 0x15f   :  { %1628 = vset.pattern.permute.xlu0 %v2182_v0  ;;  %1488 = vmatprep.subr.bf16.mxu0 %v2183_v3  ;;  %v1629_v4 = vld [vmem:[#allocation8] sm:$0x3f]   ;;  %vm324_vm0 = vcmask 1045504   ;;  %vm2184_vm1 = vmmov 0   ;;  %v1630_v6 = vld [vmem:[#allocation11] sm:$0xff]   ;;  %v1631_v7 = vld [vmem:[#allocation11 + $0x8] sm:$0xff]  }
 0x160   :  { %295 = vperm.xlu0 %1628, %v291_v1   ;;  %1494 = vmatprep.subr.bf16.mxu1 %v2183_v3  ;;  %v326_v5 = vsel %vm324_vm0, %v1629_v4, 0  ;;  %v1632_v8 = vld [vmem:[#allocation11 + $0x10] sm:$0xff]   ;;  %v1634_v9 = vld [vmem:[#allocation11 + $0x18] sm:$0xff]   ;;  %v1636_v10 = vld [vmem:[#allocation11 + $0x20] sm:$0xff]   ;;  %vm499_vm2 = vcmask 1041408   ;;  %vm320_vm3 = vcmask 97280  }
 0x161   :  { %1489 = vmatpush3.bf16.msra.mxu0 %v326_v5  ;;  %1490 = vmatprep.mubr.msk.bf16.mxu0 %vm2184_vm1, %v2183_v3  ;;  %v1638_v11 = vld [vmem:[#allocation11 + $0x28] sm:$0xff]   ;;  %v487_v16 = vld [vmem:[#allocation14] sm:$0x3]  ;;  %v484_v21 = vld [vmem:[#allocation5] sm:$0xff]  ;;  %vm495_vm4 = vcmask 31744   ;;  %s2185_s17 = smov [#allocation31]  }
 0x162   :  { %1514 = vmatprep.subr.bf16.mxu0 %v2183_v3  ;;  %1510 = vmatprep.mubr.msk.bf16.mxu1 %vm2184_vm1, %v2183_v3  ;;  %v289_v13 = vld [vmem:[#allocation2] sm:$0xff]  ;;  %v290_v14 = vld [vmem:[#allocation2 + $0x8] sm:$0xff]  ;;  %v501_v20 = vsel %vm499_vm2, %v487_v16, 0  ;;  %v485_v22 = vld [vmem:[#allocation5 + $0x8] sm:$0xff]  ;;  %s1329_s4 = sshll.u32 %s2185_s17, 4  ;;  %s1330_s4 = int_to_ptr.vmem [resolvable:$true] %s1329_s4 }
 0x163   :  { %1495 = vmatpush3.bf16.msra.mxu1 %v1630_v6  ;;  %v486_v23 = vpack.c.bf16 %v485_v22, %v484_v21  ;;  %v1633_v24 = vld [vmem:[#allocation17] sm:$0xff]   ;;  %v1635_v25 = vld [vmem:[#allocation17 + $0x8] sm:$0xff]   ;;  %v1637_v26 = vld [vmem:[#allocation17 + $0x10] sm:$0xff]   ;;  %s2114_s29 = scalar_lea.vmem %s1330_s4, 512  ;;  %p2119_p5 = scmp.lt.s32.totalorder %s1330_s4, %s1330_s4 }
 0x164   :  { %300 = vperm.xlu0 %1628, %v292_v2   ;;  %1496 = vmatprep.subr.bf16.mxu1 %v2183_v3  ;;  %v1639_v27 = vld [vmem:[#allocation17 + $0x18] sm:$0xff]   ;;  %v1640_v28 = vld [vmem:[#allocation11 + $0x30] sm:$0xff]   ;;  %v1641_v29 = vld [vmem:[#allocation17 + $0x20] sm:$0xff]   ;;  %p2115_p4 = scmp.ne.s32.totalorder %s1330_s4, %s2114_s29  ;;  %p2120_p6 = scmp.lt.s32.totalorder %s2114_s29, %s2114_s29 }
 0x165   :  { %v1642_v30 = vld [vmem:[#allocation11 + $0x38] sm:$0xff]   ;;  %v1643_v31 = vld [vmem:[#allocation17 + $0x28] sm:$0xff]   ;;  %v1362_v43 = vld [vmem:[#allocation16] ss:$0 sm:$0xff] }
 0x166   :  { %v1644_v32 = vld [vmem:[#allocation17 + $0x30] sm:$0xff]   ;;  %v1645_v33 = vld [vmem:[#allocation17 + $0x38] sm:$0xff]   ;;  %v1648_v44 = vld [vmem:[#allocation22] sm:$0xff]   ;;  %p2121_p7 = por %p2120_p6, %p2119_p5 }
 0x167   :  { %1497 = vmatpush3.bf16.msra.mxu1 %v1631_v7  ;;  %v1350_v34 = vld [vmem:[#allocation10] ss:$0 sm:$0xff]  ;;  %v1650_v50 = vld [vmem:[#allocation22 + $0x8] sm:$0xff]   ;;  %v1646_v55 = vld [vmem:[#allocation20] sm:$0xff]  }
 0x168   :  { %1498 = vmatprep.subr.bf16.mxu1 %v2183_v3  ;;  %v1652_v56 = vld [vmem:[#allocation22 + $0x10] sm:$0xff]   ;;  %v1647_v58 = vld [vmem:[#allocation20 + $0x8] sm:$0xff]   ;;  %v1654_v59 = vld [vmem:[#allocation22 + $0x18] sm:$0xff]   ;;  %p2122_p8 = pnand %p2121_p7, %p2115_p4 }
 0x169   :  { %v1649_v60 = vld [vmem:[#allocation20 + $0x10] sm:$0xff]   ;;  %v1651_v61 = vld [vmem:[#allocation20 + $0x18] sm:$0xff]   ;;  %v1653_v62 = vld [vmem:[#allocation20 + $0x20] sm:$0xff]  }
 0x16a   :  { %v1655_v63 = vld [vmem:[#allocation20 + $0x28] sm:$0xff]   ;;  %v1656_v1 = vld [vmem:[#allocation22 + $0x20] sm:$0xff]   ;;  %v1657_v2 = vld [vmem:[#allocation20 + $0x30] sm:$0xff]  }
 0x16b   :  { %1499 = vmatpush3.bf16.msra.mxu1 %v1632_v8  ;;  %v1658_v4 = vld [vmem:[#allocation22 + $0x28] sm:$0xff]   ;;  %v1659_v5 = vld [vmem:[#allocation20 + $0x38] sm:$0xff]   ;;  %v1660_v6 = vld [vmem:[#allocation22 + $0x30] sm:$0xff]  }
 0x16c   :  { %1500 = vmatprep.subr.bf16.mxu1 %v2183_v3  ;;  %v1661_v7 = vld [vmem:[#allocation22 + $0x38] sm:$0xff]  }
 0x16d   :  { %v1353_v8 = vld [vmem:[#allocation13] ss:$0 sm:$0xff]  ;;  %v1364_v16 = vld [vmem:[#allocation19] ss:$0 sm:$0xff] }
 0x16f   :  { %1501 = vmatpush3.bf16.msra.mxu1 %v1634_v9 }
 0x170   :  { %1502 = vmatprep.subr.bf16.mxu1 %v2183_v3 }
 0x173   :  { %1503 = vmatpush3.bf16.msra.mxu1 %v1636_v10 }
 0x174   :  { %1504 = vmatprep.subr.bf16.mxu1 %v2183_v3 }
 0x177   :  { %1505 = vmatpush3.bf16.msra.mxu1 %v1638_v11 }
 0x178   :  { %1506 = vmatprep.subr.bf16.mxu1 %v2183_v3 }
 0x17b   :  { %1507 = vmatpush3.bf16.msra.mxu1 %v1640_v28  ;;  %v1666_v28 = vld [vmem:[#allocation25 + $0x20] sm:$0xff]  }
 0x17c   :  { %1508 = vmatprep.subr.bf16.mxu1 %v2183_v3 }
 0x17f   :  { %1509 = vmatpush3.bf16.msra.mxu1 %v1642_v30  ;;  %v1668_v30 = vld [vmem:[#allocation25 + $0x30] sm:$0xff]  }
 0x180   :  { %1540 = vmatprep.subr.bf16.mxu1 %v2183_v3 }
 0x1df   :  { %v296_v12 = vpop.permute.xlu0 %295 }
 0x1e0   :  { %v303_v17 = vmul.f32 %v296_v12, %v289_v13 }
 0x1e3   :  { %v301_v15 = vpop.permute.xlu0 %300 }
 0x1e4   :  { %v304_v18 = vmul.f32 %v301_v15, %v290_v14 }
 0x1e6   :  { %v305_v19 = vpack.c.bf16 %v304_v18, %v303_v17 }
 0x1e8   :  { %1491 = vmatmul.mubr.msk.bf16.vlgmr.msra.gmra.mrb[0].mxu0 %vm320_vm3, %v305_v19 }
 0x1e9   :  { %1515 = vmatpush3.bf16.msra.mxu0 %v501_v20  ;;  %1516 = vmatprep.mubr.msk.bf16.mxu0 %vm2184_vm1, %v2183_v3 }
 0x1ea   :  { %1520 = vmatprep.subr.bf16.mxu0 %v2183_v3 }
 0x1f0   :  { %1517 = vmatmul.mubr.msk.bf16.vlgmr.msra.gmra.mrb[4].mxu0 %vm495_vm4, %v486_v23  ;;  %v1662_v23 = vld [vmem:[#allocation25] sm:$0xff]  }
 0x1f1   :  { %1521 = vmatpush3.bf16.msra.mxu0 %v1633_v24  ;;  %1536 = vmatprep.mubr.msk.bf16.mxu0 %vm2184_vm1, %v2183_v3 }
 0x1f2   :  { %1522 = vmatprep.subr.bf16.mxu0 %v2183_v3 }
 0x1f5   :  { %1523 = vmatpush3.bf16.msra.mxu0 %v1635_v25  ;;  %v1663_v25 = vld [vmem:[#allocation25 + $0x8] sm:$0xff]  }
 0x1f6   :  { %1524 = vmatprep.subr.bf16.mxu0 %v2183_v3 }
 0x1f9   :  { %1525 = vmatpush3.bf16.msra.mxu0 %v1637_v26  ;;  %v1664_v26 = vld [vmem:[#allocation25 + $0x10] sm:$0xff]  }
 0x1fa   :  { %1526 = vmatprep.subr.bf16.mxu0 %v2183_v3 }
 0x1fd   :  { %1527 = vmatpush3.bf16.msra.mxu0 %v1639_v27  ;;  %v1665_v27 = vld [vmem:[#allocation25 + $0x18] sm:$0xff]  }
 0x1fe   :  { %1528 = vmatprep.subr.bf16.mxu0 %v2183_v3 }
 0x201   :  { %1529 = vmatpush3.bf16.msra.mxu0 %v1641_v29  ;;  %v1667_v29 = vld [vmem:[#allocation25 + $0x28] sm:$0xff]  }
 0x202   :  { %1530 = vmatprep.subr.bf16.mxu0 %v2183_v3 }
 0x205   :  { %1531 = vmatpush3.bf16.msra.mxu0 %v1643_v31  ;;  %v1669_v31 = vld [vmem:[#allocation25 + $0x38] sm:$0xff]  }
 0x206   :  { %1532 = vmatprep.subr.bf16.mxu0 %v2183_v3 }
 0x209   :  { %1533 = vmatpush3.bf16.msra.mxu0 %v1644_v32  ;;  %v1670_v32 = vld [vmem:[#allocation28] ss:$16 sps:$4 sm:$0xff]  }
 0x20a   :  { %1534 = vmatprep.subr.bf16.mxu0 %v2183_v3 }
 0x20d   :  { %1535 = vmatpush3.bf16.msra.mxu0 %v1645_v33  ;;  %v1672_v33 = vld [vmem:[#allocation28 + $0x4] ss:$16 sps:$4 sm:$0xff]  }
 0x20e   :  { %1560 = vmatprep.subr.bf16.mxu0 %v2183_v3 }
 0x2bb   :  { %v362_v35 = vpop.f32.mrb[0].mxu0 }
 0x2bc   :  { %v363_v36 = vadd.f32 %v1350_v34, %v362_v35  ;;  %v1492_v37 = vpop.f32.mrb[1].mxu0  ;;  %v1678_v35 = vld [vmem:[#allocation28 + $0x24] ss:$16 sps:$4 sm:$0xff]  }
 0x2bd   :  { %v365_v38 = vpop.f32.mrb[2].mxu0  ;;  %v1684_v37 = vld [vmem:[#allocation28 + $0x44] ss:$16 sps:$4 sm:$0xff]  }
 0x2be   :  { %v366_v39 = vadd.f32 %v1350_v34, %v365_v38  ;;  %v1493_v40 = vpop.f32.mrb[3].mxu0  ;;  %v369_v41 = vmax.f32 %v363_v36, 0.0  ;;  %v1675_v34 = vld [vmem:[#allocation28 + $0xc] ss:$16 sps:$4 sm:$0xff]   ;;  %v1676_v36 = vld [vmem:[#allocation28 + $0x20] ss:$16 sps:$4 sm:$0xff]  }
 0x2bf   :  { %v1682_v38 = vld [vmem:[#allocation28 + $0x40] ss:$16 sps:$4 sm:$0xff]  }
 0x2c0   :  { %v370_v42 = vmax.f32 %v366_v39, 0.0  ;;  %v1690_v39 = vld [vmem:[#allocation28 + $0x64] ss:$16 sps:$4 sm:$0xff]   ;;  %v1688_v40 = vld [vmem:[#allocation28 + $0x60] ss:$16 sps:$4 sm:$0xff]  }
 0x2c2   :  { %v371_v45 = vpack.c.bf16 %v370_v42, %v369_v41  ;;  %v1694_v41 = vld [vmem:[#allocation28 + $0x80] ss:$16 sps:$4 sm:$0xff]   ;;  %v1702_v42 = vld [vmem:[#allocation28 + $0xa4] ss:$16 sps:$4 sm:$0xff]  }
 0x2c3   :  { %v537_v46 = vpop.f32.mrb[4].mxu0 }
 0x2c4   :  { %v538_v47 = vadd.f32 %v1362_v43, %v537_v46  ;;  %1511 = vmatmul.mubr.bf16.vlgmr.msra.gmra.mrb[0].mxu1 %v371_v45  ;;  %v1518_v48 = vpop.f32.mrb[5].mxu0  ;;  %v1706_v45 = vld [vmem:[#allocation28 + $0xc0] ss:$16 sps:$4 sm:$0xff]  }
 0x2c5   :  { %v540_v49 = vpop.f32.mrb[6].mxu0  ;;  %1541 = vmatpush3.bf16.msra.mxu1 %v1648_v44  ;;  %1556 = vmatprep.mubr.msk.bf16.mxu1 %vm2184_vm1, %v2183_v3  ;;  %v1708_v44 = vld [vmem:[#allocation28 + $0xc4] ss:$16 sps:$4 sm:$0xff]  }
 0x2c6   :  { %v541_v51 = vadd.f32 %v1362_v43, %v540_v49  ;;  %v1519_v52 = vpop.f32.mrb[7].mxu0  ;;  %1542 = vmatprep.subr.bf16.mxu1 %v2183_v3  ;;  %v544_v53 = vmax.f32 %v538_v47, 0.0  ;;  %v1700_v43 = vld [vmem:[#allocation28 + $0xa0] ss:$16 sps:$4 sm:$0xff]  }
 0x2c8   :  { %v545_v54 = vmax.f32 %v541_v51, 0.0  ;;  %v1389_v51 = vld [vmem:[#allocation23] ss:$0 sm:$0xff] }
 0x2c9   :  { %1543 = vmatpush3.bf16.msra.mxu1 %v1650_v50 }
 0x2ca   :  { %v546_v57 = vpack.c.bf16 %v545_v54, %v544_v53  ;;  %1544 = vmatprep.subr.bf16.mxu1 %v2183_v3 }
 0x2cc   :  { %1537 = vmatmul.mubr.bf16.vlgmr.msra.gmra.mrb[8].mxu0 %v546_v57 }
 0x2cd   :  { %1561 = vmatpush3.bf16.msra.mxu0 %v1646_v55  ;;  %1545 = vmatpush3.bf16.msra.mxu1 %v1652_v56 }
 0x2ce   :  { %1562 = vmatprep.subr.bf16.mxu0 %v2183_v3  ;;  %1546 = vmatprep.subr.bf16.mxu1 %v2183_v3 }
 0x2cf   :  { %1576 = vmatprep.mubr.msk.bf16.mxu0 %vm2184_vm1, %v2183_v3 }
 0x2d1   :  { %1563 = vmatpush3.bf16.msra.mxu0 %v1647_v58  ;;  %1547 = vmatpush3.bf16.msra.mxu1 %v1654_v59 }
 0x2d2   :  { %1564 = vmatprep.subr.bf16.mxu0 %v2183_v3  ;;  %1548 = vmatprep.subr.bf16.mxu1 %v2183_v3 }
 0x2d5   :  { %1565 = vmatpush3.bf16.msra.mxu0 %v1649_v60  ;;  %1549 = vmatpush3.bf16.msra.mxu1 %v1656_v1  ;;  %v1679_v1 = vld [vmem:[#allocation28 + $0x28] ss:$16 sps:$4 sm:$0xff]  }
 0x2d6   :  { %1566 = vmatprep.subr.bf16.mxu0 %v2183_v3  ;;  %1550 = vmatprep.subr.bf16.mxu1 %v2183_v3 }
 0x2d9   :  { %1567 = vmatpush3.bf16.msra.mxu0 %v1651_v61  ;;  %1551 = vmatpush3.bf16.msra.mxu1 %v1658_v4  ;;  %v1673_v61 = vld [vmem:[#allocation28 + $0x8] ss:$16 sps:$4 sm:$0xff]  }
 0x2da   :  { %1568 = vmatprep.subr.bf16.mxu0 %v2183_v3  ;;  %1552 = vmatprep.subr.bf16.mxu1 %v2183_v3  ;;  %v1685_v4 = vld [vmem:[#allocation28 + $0x48] ss:$16 sps:$4 sm:$0xff]  }
 0x2dd   :  { %1569 = vmatpush3.bf16.msra.mxu0 %v1653_v62  ;;  %1553 = vmatpush3.bf16.msra.mxu1 %v1660_v6  ;;  %v1691_v6 = vld [vmem:[#allocation28 + $0x68] ss:$16 sps:$4 sm:$0xff]  }
 0x2de   :  { %1570 = vmatprep.subr.bf16.mxu0 %v2183_v3  ;;  %1554 = vmatprep.subr.bf16.mxu1 %v2183_v3 }
 0x2e1   :  { %1571 = vmatpush3.bf16.msra.mxu0 %v1655_v63  ;;  %1555 = vmatpush3.bf16.msra.mxu1 %v1661_v7  ;;  %v1681_v63 = vld [vmem:[#allocation28 + $0x2c] ss:$16 sps:$4 sm:$0xff]  }
 0x2e2   :  { %1572 = vmatprep.subr.bf16.mxu0 %v2183_v3  ;;  %1580 = vmatprep.subr.bf16.mxu1 %v2183_v3  ;;  %v1699_v7 = vld [vmem:[#allocation28 + $0x8c] ss:$16 sps:$4 sm:$0xff]  }
 0x2e5   :  { %1573 = vmatpush3.bf16.msra.mxu0 %v1657_v2  ;;  %v1687_v2 = vld [vmem:[#allocation28 + $0x4c] ss:$16 sps:$4 sm:$0xff]  }
 0x2e6   :  { %1574 = vmatprep.subr.bf16.mxu0 %v2183_v3 }
 0x2e9   :  { %1575 = vmatpush3.bf16.msra.mxu0 %v1659_v5  ;;  %v1693_v5 = vld [vmem:[#allocation28 + $0x6c] ss:$16 sps:$4 sm:$0xff]  }
 0x2ea   :  { %1210 = vmatprep.subr.bf16.mxu0 %v1672_v33 }
 0x397   :  { %v477_v9 = vpop.f32.mrb[0].mxu1 }
 0x398   :  { %v1512_v10 = vpop.f32.mrb[1].mxu1  ;;  %v478_v12 = vadd.f32 %v1353_v8, %v477_v9  ;;  %v1705_v9 = vld [vmem:[#allocation28 + $0xac] ss:$16 sps:$4 sm:$0xff]  }
 0x399   :  { %v480_v11 = vpop.f32.mrb[2].mxu1  ;;  %v1703_v10 = vld [vmem:[#allocation28 + $0xa8] ss:$16 sps:$4 sm:$0xff]  }
 0x39a   :  { %v481_v13 = vadd.f32 %v1353_v8, %v480_v11  ;;  %v1513_v14 = vpop.f32.mrb[3].mxu1  ;;  %v1697_v8 = vld [vmem:[#allocation28 + $0x88] ss:$16 sps:$4 sm:$0xff]   ;;  %v1711_v11 = vld [vmem:[#allocation28 + $0xcc] ss:$16 sps:$4 sm:$0xff]  }
 0x39b   :  { %v1712_v14 = vld [vmem:[#allocation28 + $0xe0] ss:$16 sps:$4 sm:$0xff]  }
 0x39c   :  { %v659_v15 = vpack.c.bf16 %v481_v13, %v478_v12  ;;  %v1714_v12 = vld [vmem:[#allocation28 + $0xe4] ss:$16 sps:$4 sm:$0xff]   ;;  %v1717_v13 = vld [vmem:[#allocation28 + $0xec] ss:$16 sps:$4 sm:$0xff]  }
 0x39e   :  { %1577 = vmatmul.mubr.bf16.vlgmr.msra.gmra.mrb[12].mxu0 %v659_v15  ;;  %v1715_v15 = vld [vmem:[#allocation28 + $0xe8] ss:$16 sps:$4 sm:$0xff]  }
 0x39f   :  { %v652_v17 = vpop.f32.mrb[8].mxu0  ;;  %1242 = vmatprep.mubr.bf16.mxu0 %v2182_v0  ;;  %1211 = vmatpush1.bf16.msra.mxu0 %v1670_v32 }
 0x3a0   :  { %v1538_v18 = vpop.f32.mrb[9].mxu0  ;;  %v653_v20 = vadd.f32 %v1364_v16, %v652_v17  ;;  %1212 = vmatprep.subr.bf16.mxu0 %v1678_v35 }
 0x3a1   :  { %v655_v19 = vpop.f32.mrb[10].mxu0 }
 0x3a2   :  { %v656_v21 = vadd.f32 %v1364_v16, %v655_v19  ;;  %v1539_v22 = vpop.f32.mrb[11].mxu0  ;;  %v1390_v16 = vld [vmem:[#allocation26] ss:$0 sm:$0xff] }
 0x3a3   :  { %1213 = vmatpush1.bf16.msra.mxu0 %v1676_v36 }
 0x3a4   :  { %v676_v24 = vpack.c.bf16 %v656_v21, %v653_v20  ;;  %1214 = vmatprep.subr.bf16.mxu0 %v1684_v37 }
 0x3a6   :  { %1557 = vmatmul.mubr.bf16.vlgmr.msra.gmra.mrb[4].mxu1 %v676_v24  ;;  %v1030_v24 = vlaneseq }
 0x3a7   :  { %1581 = vmatpush3.bf16.msra.mxu1 %v1662_v23  ;;  %1596 = vmatprep.mubr.msk.bf16.mxu1 %vm2184_vm1, %v2183_v3 }
 0x3a8   :  { %1582 = vmatprep.subr.bf16.mxu1 %v2183_v3  ;;  %1215 = vmatpush1.bf16.msra.mxu0 %v1682_v38 }
 0x3a9   :  { %1216 = vmatprep.subr.bf16.mxu0 %v1690_v39 }
 0x3ab   :  { %1583 = vmatpush3.bf16.msra.mxu1 %v1663_v25  ;;  %v1031_v25 = vshrl.u32 %v1030_v24, 7 }
 0x3ac   :  { %1584 = vmatprep.subr.bf16.mxu1 %v2183_v3  ;;  %1217 = vmatpush1.bf16.msra.mxu0 %v1688_v40 }
 0x3af   :  { %1585 = vmatpush3.bf16.msra.mxu1 %v1664_v26  ;;  %v1032_v26 = vsub.s32 0, %v1031_v25 }
 0x3b0   :  { %1586 = vmatprep.subr.bf16.mxu1 %v2183_v3 }
 0x3b3   :  { %1587 = vmatpush3.bf16.msra.mxu1 %v1665_v27  ;;  %v1040_v27 = vsub.s32 2, %v1031_v25 }
 0x3b4   :  { %1588 = vmatprep.subr.bf16.mxu1 %v2183_v3 }
 0x3b7   :  { %1589 = vmatpush3.bf16.msra.mxu1 %v1666_v28  ;;  %v1028_v28 = vld [vmem:[#allocation29] sm:$0xf] }
 0x3b8   :  { %1590 = vmatprep.subr.bf16.mxu1 %v2183_v3  ;;  %v1041_v32 = vrot.slane %v1028_v28, %v1040_v27 }
 0x3bb   :  { %1591 = vmatpush3.bf16.msra.mxu1 %v1667_v29  ;;  %v1036_v29 = vsub.s32 1, %v1031_v25 }
 0x3bc   :  { %1592 = vmatprep.subr.bf16.mxu1 %v2183_v3 }
 0x3bd   :  { %v1037_v33 = vrot.slane %v1028_v28, %v1036_v29 }
 0x3bf   :  { %1593 = vmatpush3.bf16.msra.mxu1 %v1668_v30  ;;  %v1044_v30 = vsub.s32 3, %v1031_v25 }
 0x3c0   :  { %1594 = vmatprep.subr.bf16.mxu1 %v2183_v3  ;;  %v1696_v3 = vld [vmem:[#allocation28 + $0x84] ss:$16 sps:$4 sm:$0xff]  }
 0x3c1   :  { %1218 = vmatprep.subr.bf16.mxu0 %v1696_v3 }
 0x3c2   :  { %1219 = vmatpush1.bf16.msra.mxu0 %v1694_v41 }
 0x3c3   :  { %1595 = vmatpush3.bf16.msra.mxu1 %v1669_v31  ;;  %1220 = vmatprep.subr.bf16.mxu0 %v1702_v42  ;;  %v1033_v31 = vrot.slane %v1028_v28, %v1032_v26 }
 0x3c4   :  { %1253 = vmatprep.subr.bf16.mxu1 %v1675_v34  ;;  %v1045_v34 = vrot.slane %v1028_v28, %v1044_v30 }
 0x3c6   :  { %1221 = vmatpush1.bf16.msra.mxu0 %v1700_v43 }
 0x3c7   :  { %1222 = vmatprep.subr.bf16.mxu0 %v1708_v44 }
 0x3ca   :  { %1223 = vmatpush1.bf16.msra.mxu0 %v1706_v45 }
 0x3cb   :  { %1224 = vmatprep.subr.bf16.mxu0 %v1714_v12 }
 0x3ce   :  { %1225 = vmatpush1.bf16.msra.mxu0 %v1712_v14 }
 0x471   :  { %v864_v46 = vpop.f32.mrb[12].mxu0 }
 0x472   :  { %v1578_v47 = vpop.f32.mrb[13].mxu0 }
 0x473   :  { %v867_v48 = vpop.f32.mrb[14].mxu0 }
 0x474   :  { %v1579_v49 = vpop.f32.mrb[15].mxu0 }
 0x479   :  { %v775_v50 = vpop.f32.mrb[4].mxu1 }
 0x47a   :  { %v865_v52 = vadd.f32 %v864_v46, %v775_v50  ;;  %v1558_v53 = vpop.f32.mrb[5].mxu1 }
 0x47b   :  { %v778_v54 = vpop.f32.mrb[6].mxu1 }
 0x47c   :  { %v878_v55 = vadd.f32 %v1389_v51, %v865_v52  ;;  %v868_v56 = vadd.f32 %v867_v48, %v778_v54  ;;  %v1559_v57 = vpop.f32.mrb[7].mxu1 }
 0x47e   :  { %v879_v58 = vadd.f32 %v1389_v51, %v868_v56  ;;  %v880_v59 = vmax.f32 %v878_v55, 0.0 }
 0x480   :  { %v881_v60 = vmax.f32 %v879_v58, 0.0 }
 0x482   :  { %v882_v62 = vpack.c.bf16 %v881_v60, %v880_v59 }
 0x484   :  { %1597 = vmatmul.mubr.bf16.vlgmr.msra.gmra.mrb[8].mxu1 %v882_v62 }
 0x485   :  { %1254 = vmatpush1.bf16.msra.mxu1 %v1673_v61  ;;  %1285 = vmatprep.mubr.bf16.mxu1 %v2182_v0  ;;  %v1709_v0 = vld [vmem:[#allocation28 + $0xc8] ss:$16 sps:$4 sm:$0xff]  }
 0x486   :  { %1255 = vmatprep.subr.bf16.mxu1 %v1681_v63 }
 0x489   :  { %1256 = vmatpush1.bf16.msra.mxu1 %v1679_v1 }
 0x48a   :  { %1257 = vmatprep.subr.bf16.mxu1 %v1687_v2 }
 0x48d   :  { %1258 = vmatpush1.bf16.msra.mxu1 %v1685_v4 }
 0x48e   :  { %1259 = vmatprep.subr.bf16.mxu1 %v1693_v5 }
 0x491   :  { %1260 = vmatpush1.bf16.msra.mxu1 %v1691_v6 }
 0x492   :  { %1261 = vmatprep.subr.bf16.mxu1 %v1699_v7 }
 0x495   :  { %1262 = vmatpush1.bf16.msra.mxu1 %v1697_v8 }
 0x496   :  { %1263 = vmatprep.subr.bf16.mxu1 %v1705_v9 }
 0x499   :  { %1264 = vmatpush1.bf16.msra.mxu1 %v1703_v10 }
 0x49a   :  { %1265 = vmatprep.subr.bf16.mxu1 %v1711_v11 }
 0x49d   :  { %1266 = vmatpush1.bf16.msra.mxu1 %v1709_v0 }
 0x49e   :  { %1267 = vmatprep.subr.bf16.mxu1 %v1717_v13 }
 0x4a1   :  { %1268 = vmatpush1.bf16.msra.mxu1 %v1715_v15 }
 0x557   :  { %v988_v17 = vpop.f32.mrb[8].mxu1 }
 0x558   :  { %v1598_v18 = vpop.f32.mrb[9].mxu1  ;;  %v989_v20 = vadd.f32 %v1390_v16, %v988_v17 }
 0x559   :  { %v991_v19 = vpop.f32.mrb[10].mxu1 }
 0x55a   :  { %v992_v21 = vadd.f32 %v1390_v16, %v991_v19  ;;  %v1599_v22 = vpop.f32.mrb[11].mxu1 }
 0x55c   :  { %v995_v23 = vpack.c.bf16 %v992_v21, %v989_v20 }
 0x55e   :  { %1243 = vmatmul.mubr.bf16.vlgmr.msra.gmra.mrb[16].mxu0 %v995_v23  ;;  %1286 = vmatmul.mubr.bf16.vlgmr.msra.gmra.mrb[12].mxu1 %v995_v23 }
 0x631   :  { %v1244_v35 = vpop.f32.mrb[16].mxu0  ;;  %v1287_v36 = vpop.f32.mrb[12].mxu1 }
 0x632   :  { %v1245_v37 = vadd.f32 %v1244_v35, %v1033_v31  ;;  %v1288_v38 = vadd.f32 %v1287_v36, %v1041_v32  ;;  %v1246_v39 = vpop.f32.mrb[17].mxu0  ;;  %v1289_v40 = vpop.f32.mrb[13].mxu1 }
 0x633   :  { %v1247_v3 = vadd.f32 %v1246_v39, %v1037_v33  ;;  %v1290_v41 = vadd.f32 %v1289_v40, %v1045_v34  ;;  %v1248_v42 = vpop.f32.mrb[18].mxu0  ;;  %v1291_v43 = vpop.f32.mrb[14].mxu1 }
 0x634   :  { %v1249_v44 = vadd.f32 %v1248_v42, %v1033_v31  ;;  %v1292_v45 = vadd.f32 %v1291_v43, %v1041_v32  ;;  %v1250_v46 = vpop.f32.mrb[19].mxu0  ;;  %v1293_v47 = vpop.f32.mrb[15].mxu1 }
 0x635   :  { %v1435_v48 = vpack.c.bf16 %v1247_v3, %v1245_v37  ;;  %v1436_v49 = vpack.c.bf16 %v1290_v41, %v1288_v38  ;;  %v1251_v50 = vadd.f32 %v1250_v46, %v1037_v33  ;;  %v1294_v51 = vadd.f32 %v1293_v47, %v1045_v34 }
 0x637   :  { %1320 = vst [vmem:[#allocation31] sm:$0xff] %v1435_v48  ;;  %1321 = vst [vmem:[#allocation31 + $0x8] sm:$0xff] %v1436_v49  ;;  %v1437_v52 = vpack.c.bf16 %v1251_v50, %v1249_v44  ;;  %v1438_v53 = vpack.c.bf16 %v1294_v51, %v1292_v45 }
 0x639   :  { %1322 = vst [vmem:[#allocation31 + $0x10] sm:$0xff] %v1437_v52  ;;  %1323 = vst [vmem:[#allocation31 + $0x18] sm:$0xff] %v1438_v53 }
 0x63a   :  { %2125 = shalt.err (!%p2122_p8)
}
 0x63b   :  { %s2665_s8 = sld [smem:[#allocation46_spill]] }
 0x641   :  { %s2126_s7 = scalar_lea.hbm %s2665_s8, 512 }
 0x642   :  { %p2127_p9 = scmp.ne.s32.totalorder %s2665_s8, %s2126_s7  ;;  %p2130_p10 = scmp.lt.u32.totalorder %s2126_s7, %s2665_s8 }
 0x644   :  { %p2132_p11 = pnand %p2130_p10, %p2127_p9 }
 0x646   :  { %2135 = shalt.err (!%p2132_p11)
}
 0x647   :  { %1335 = dma.vmem_to_hbm [thread:$0]  %s1330_s4, 512, %s2665_s8, [#allocation4], %s2179_s14, %s2179_s14, %s2180_s28  }
 0x648   :  { %2156 = dma.done.wait [#allocation4], 512  }
 0x649   :  { %2157 = vsyncadd [#allocation4], 4294966784 }
 0x64a   :  { %1339 = vsyncpa [#allocation3], 1 }
 0x64b   :  { %1340 = vsyncpa [#allocation6], 1 }
 0x64c   :  { %1341 = vsyncpa [#allocation9], 1 }
 0x64d   :  { %1342 = vsyncpa [#allocation12], 1 }
 0x64e   :  { %1343 = vsyncpa [#allocation15], 1 }
 0x64f   :  { %1344 = vsyncpa [#allocation18], 1 }
 0x650   :  { %1345 = vsyncpa [#allocation21], 1 }
 0x651   :  { %1346 = vsyncpa [#allocation24], 1 }
 0x652   :  { %1347 = vsyncpa [#allocation27], 1 }
 0x653   :  { %1348 = vsyncpa [#allocation30], 1 }
 0x654   :  { %1349 = vsyncpa [#allocation4], 1 }

</bundles_post_ra>
